<compile_context>
chip_gen: v5e
topology: v5e:2x2
jax: 0.10.0
libtpu: 0.0.40
codegen_flags: <defaults>
</compile_context>

<pallas_src>
import jax
import jax.numpy as jnp
from jax.experimental import pallas as pl
from jax.experimental.pallas import tpu as pltpu


def _round_up(x, m):
    return (x + m - 1) // m * m


def _pad2(a, rows, cols):
    return jnp.pad(a, ((0, rows - a.shape[0]), (0, cols - a.shape[1])))


# ------------------------ fused 2-layer forward (1 call) ---------------------

def model_forward(params, graph, x, e_feat):
    """conv1 + ReLU + conv2 of attHGNN as one fused Pallas kernel."""
    ntypes = list(graph["ntypes"].keys())
    n_nodes = graph["ntypes"]
    nt_index = {nt: i for i, nt in enumerate(ntypes)}
    n_t = len(ntypes)

    in_f = params["conv1"]["lin_w_top"].shape[0]
    hid_f = params["conv1"]["lin_w_top"].shape[1]
    out_f = params["conv2"]["lin_w_top"].shape[1]
    fp = _round_up(max(in_f, hid_f, out_f), 128)                 # lane-dense width
    np_nodes = {nt: _round_up(n, 8) for nt, n in n_nodes.items()}  # sublane pad

    # Group incoming edge types per destination node type (stack order = list order).
    per_dst = {nt: [] for nt in ntypes}
    for etype, src_nt, dst_nt, a_norm in graph["etypes"]:
        assert etype in e_feat            # 'att' only exists for etypes in e_feat
        idx = int(etype.split("_")[1]) - 1
        per_dst[dst_nt].append((src_nt, a_norm, idx))

    meta, x_pad, a_stacks = [], [], []
    for nt in ntypes:
        entries = per_dst[nt]
        k = len(entries)
        src_i = None
        if k:
            srcs = {s for s, _, _ in entries}
            # TODO(synk): fused path assumes one src ntype per dst ntype.
            assert len(srcs) == 1, "mixed-src dst ntype not supported by fused kernel"
            src_nt = entries[0][0]
            src_i = nt_index[src_nt]
            a_stacks.append(jnp.stack(
                [_pad2(a, np_nodes[nt], np_nodes[src_nt]) for _, a, _ in entries],
                axis=0))                                          # (K, Nd_pad, Ns_pad)
        meta.append(dict(k=k, src=src_i, idxs=[i for _, _, i in entries]))
        x_pad.append(_pad2(x[nt].astype(jnp.float32), np_nodes[nt], fp))

    # Per-(layer, dst ntype) combine scale: s_k = tw2[k] * att_k  (tw2 factor == 1
    # when K == 1, matching the squeeze(1) path in the PyTorch module).
    def build_scales(p):
        tw, tw2 = p["type_weights"], p["type_weights2"].reshape(-1)
        f = tw.shape[1]
        out = []
        for m in meta:
            if m["k"] == 0:
                continue
            rows = [(1.0 if m["k"] == 1 else tw2[j]) * tw[idx]
                    for j, idx in enumerate(m["idxs"])]
            s = jnp.stack(rows, axis=0)                           # (K, f)
            out.append(jnp.pad(s, ((0, 0), (0, fp - f)))[:, None, :])  # (K, 1, fp)
        return out

    def build_linear(p):
        return (_pad2(p["lin_w_top"], fp, fp),
                _pad2(p["lin_w_bot"], fp, fp),
                _pad2(p["lin_b"], 1, fp))

    s1, s2 = build_scales(params["conv1"]), build_scales(params["conv2"])
    w1t, w1b, b1 = build_linear(params["conv1"])
    w2t, w2b, b2 = build_linear(params["conv2"])

    inputs = list(x_pad) + list(a_stacks) + s1 + s2 + [w1t, w1b, b1, w2t, w2b, b2]
    n_e = len(a_stacks)

    # --------------------------- the fused kernel ----------------------------
    def kernel(*refs):
        pos = 0
        xr = refs[pos:pos + n_t]; pos += n_t
        ar = refs[pos:pos + n_e]; pos += n_e
        s1r = refs[pos:pos + n_e]; pos += n_e
        s2r = refs[pos:pos + n_e]; pos += n_e
        w1t_r, w1b_r, b1_r, w2t_r, w2b_r, b2_r = refs[pos:pos + 6]; pos += 6
        out_r = refs[pos:pos + n_t]

        def layer(h, wt_r, wb_r, b_r, s_refs, relu):
            wt, wb, bias = wt_r[...], wb_r[...], b_r[...]
            outs, ei = [], 0
            for i, m in enumerate(meta):
                # fused concat + Linear: [h, h_new] @ W == h @ W_top + h_new @ W_bot
                y = jnp.dot(h[i], wt, preferred_element_type=jnp.float32) + bias
                if m["k"]:
                    src_h, a_ref, s_ref = h[m["src"]], ar[ei], s_refs[ei]
                    ei += 1
                    acc = None
                    # Unrolled per-edge-type mean aggregation + stack/tw2 combine:
                    #   acc = sum_k (A_norm_k @ H_src) * s_k   (MXU push + VPU fma,
                    # straight-line in one kernel body -> no grid-step overhead)
                    for k in range(m["k"]):
                        msg = jnp.dot(a_ref[k], src_h,
                                      preferred_element_type=jnp.float32) * s_ref[k]
                        acc = msg if acc is None else acc + msg
                    y = y + jnp.dot(acc, wb, preferred_element_type=jnp.float32)
                if relu:
                    y = jnp.maximum(y, 0.0)
                outs.append(y)
            return outs

        h0 = [r[...] for r in xr]
        h1 = layer(h0, w1t_r, w1b_r, b1_r, s1r, relu=True)     # conv1 + ReLU
        h2 = layer(h1, w2t_r, w2b_r, b2_r, s2r, relu=False)    # conv2
        for i in range(n_t):
            out_r[i][...] = h2[i]

    vmem_spec = pl.BlockSpec(memory_space=pltpu.MemorySpace.VMEM)
    # TODO(synk): for non-toy graphs, switch to a tiled ("parallel","arbitrary")
    # grid over N_dst, cast MXU operands to bf16 on v6e/v7x (keep f32 accum),
    # use a sparse/CSR aggregation via PrefetchScalarGridSpec instead of dense A,
    # and set vmem_limit_bytes for v7x (64 MiB phys) / v5e (16 MiB scoped default).
    out_padded = pl.pallas_call(
        kernel,
        out_shape=tuple(jax.ShapeDtypeStruct((np_nodes[nt], fp), jnp.float32)
                        for nt in ntypes),
        in_specs=[vmem_spec] * len(inputs),
        out_specs=tuple(vmem_spec for _ in ntypes),
    )(*inputs)

    return {nt: out_padded[i][:n_nodes[nt], :out_f]
            for i, nt in enumerate(ntypes)}


# ----------------------------- parameter init --------------------------------

def _xavier_uniform(key, shape):
    fan_out, fan_in = shape[0], shape[1]
    bound = (6.0 / (fan_in + fan_out)) ** 0.5
    return jax.random.uniform(key, shape, jnp.float32, -bound, bound)


def init_att_hgnn(key, in_feats, out_feats):
    k1, k2, k3, k4 = jax.random.split(key, 4)
    tw = _xavier_uniform(k1, (34, in_feats))
    tw2 = _xavier_uniform(k2, (1, 17))
    bound = 1.0 / (in_feats * 2) ** 0.5
    lw = jax.random.uniform(k3, (out_feats, in_feats * 2), jnp.float32, -bound, bound)
    lb = jax.random.uniform(k4, (out_feats,), jnp.float32, -bound, bound)
    lw_t = lw.T                                  # (2*in_feats, out_feats)
    return {
        "type_weights": tw,
        "type_weights2": tw2,
        "lin_w_top": lw_t[:in_feats],            # multiplies h      (concat fused)
        "lin_w_bot": lw_t[in_feats:],            # multiplies h_new
        "lin_b": lb.reshape(1, out_feats),
    }


# ----------------------------- synthetic graph -------------------------------

def build_a_norm(key, n_src, n_dst, n_edges):
    ks, kd = jax.random.split(key)
    src = jax.random.randint(ks, (n_edges,), 0, n_src)
    dst = jax.random.randint(kd, (n_edges,), 0, n_dst)
    a = jnp.zeros((n_dst, n_src), jnp.float32).at[dst, src].add(1.0)
    deg = a.sum(axis=1, keepdims=True)
    # DGL mean reduce gives 0 for zero-in-degree nodes.
    return jnp.where(deg > 0, a / jnp.maximum(deg, 1.0), 0.0), n_edges


# --------------------------------- main ---------------------------------------

if __name__ == "__main__":
    key = jax.random.PRNGKey(0)

    in_feats, h_feats, out_feats = 16, 32, 8
    n_nodes = {"A": 6, "B": 5}

    # Edge types: et_1 .. et_17 are A->B (dst "B" stacks 17 results and uses
    # type_weights2), et_18 is B->A (single-etype dst -> squeeze path).
    etype_defs = [(f"et_{i}", "A", "B") for i in range(1, 18)] + [("et_18", "B", "A")]

    key, *ekeys = jax.random.split(key, 1 + len(etype_defs))
    etypes, e_feat = [], {}
    for (name, s_nt, d_nt), ek in zip(etype_defs, ekeys):
        ek, kcount = jax.random.split(ek)
        n_edges = int(jax.random.randint(kcount, (), 3, 9))
        a_norm, ne = build_a_norm(ek, n_nodes[s_nt], n_nodes[d_nt], n_edges)
        etypes.append((name, s_nt, d_nt, a_norm))
        e_feat[name] = jnp.zeros((ne, 1), jnp.float32)  # only keys/edge counts matter

    graph = {"ntypes": n_nodes, "etypes": etypes}

    key, kx_a, kx_b, kp1, kp2 = jax.random.split(key, 5)
    x = {
        "A": jax.random.normal(kx_a, (n_nodes["A"], in_feats), jnp.float32),
        "B": jax.random.normal(kx_b, (n_nodes["B"], in_feats), jnp.float32),
    }

    params = {
        "conv1": init_att_hgnn(kp1, in_feats, h_feats),
        "conv2": init_att_hgnn(kp2, h_feats, out_feats),
    }

    out = model_forward(params, graph, x, e_feat)
    out = jax.tree_util.tree_map(jax.block_until_ready, out)

    assert out["A"].shape == (n_nodes["A"], out_feats)
    assert out["B"].shape == (n_nodes["B"], out_feats)
    assert bool(jnp.all(jnp.isfinite(out["A"]))) and bool(jnp.all(jnp.isfinite(out["B"])))
    print("KERNEL_OK")
</pallas_src>

<mosaic_0001>
module attributes {stable_mosaic.version = 11 : i64} {
  func.func @kernel(%arg0: memref<8x128xf32, #tpu.memory_space<vmem>>, %arg1: memref<8x128xf32, #tpu.memory_space<vmem>>, %arg2: memref<1x8x8xf32, #tpu.memory_space<vmem>>, %arg3: memref<17x8x8xf32, #tpu.memory_space<vmem>>, %arg4: memref<1x1x128xf32, #tpu.memory_space<vmem>>, %arg5: memref<17x1x128xf32, #tpu.memory_space<vmem>>, %arg6: memref<1x1x128xf32, #tpu.memory_space<vmem>>, %arg7: memref<17x1x128xf32, #tpu.memory_space<vmem>>, %arg8: memref<128x128xf32, #tpu.memory_space<vmem>>, %arg9: memref<128x128xf32, #tpu.memory_space<vmem>>, %arg10: memref<1x128xf32, #tpu.memory_space<vmem>>, %arg11: memref<128x128xf32, #tpu.memory_space<vmem>>, %arg12: memref<128x128xf32, #tpu.memory_space<vmem>>, %arg13: memref<1x128xf32, #tpu.memory_space<vmem>>, %arg14: memref<8x128xf32, #tpu.memory_space<vmem>>, %arg15: memref<8x128xf32, #tpu.memory_space<vmem>>) attributes {dimension_semantics = [], scalar_prefetch = 0 : i64, scratch_operands = 0 : i64, tpu.core_type = #tpu.core_type<tc>} {
    %c0 = arith.constant 0 : index
    %c0_0 = arith.constant 0 : index
    %0 = vector.load %arg0[%c0, %c0_0] : memref<8x128xf32, #tpu.memory_space<vmem>>, vector<8x128xf32>
    %c0_1 = arith.constant 0 : index
    %c0_2 = arith.constant 0 : index
    %1 = vector.load %arg1[%c0_1, %c0_2] : memref<8x128xf32, #tpu.memory_space<vmem>>, vector<8x128xf32>
    %c0_3 = arith.constant 0 : index
    %c0_4 = arith.constant 0 : index
    %2 = vector.load %arg8[%c0_3, %c0_4] : memref<128x128xf32, #tpu.memory_space<vmem>>, vector<128x128xf32>
    %c0_5 = arith.constant 0 : index
    %c0_6 = arith.constant 0 : index
    %3 = vector.load %arg9[%c0_5, %c0_6] : memref<128x128xf32, #tpu.memory_space<vmem>>, vector<128x128xf32>
    %c0_7 = arith.constant 0 : index
    %c0_8 = arith.constant 0 : index
    %4 = vector.load %arg10[%c0_7, %c0_8] : memref<1x128xf32, #tpu.memory_space<vmem>>, vector<1x128xf32>
    %cst = arith.constant dense<0.000000e+00> : vector<8x128xf32>
    %5 = tpu.matmul %0, %2, %cst {dimension_numbers = #tpu.dot_dimension_numbers<[1], [0], [0], [1], [0, 0, 1, 1], [], []>} : vector<8x128xf32>, vector<128x128xf32>, vector<8x128xf32> -> vector<8x128xf32>
    %6 = vector.broadcast %4 : vector<1x128xf32> to vector<8x128xf32>
    %7 = arith.addf %5, %6 : vector<8x128xf32>
    %c0_9 = arith.constant 0 : index
    %c0_10 = arith.constant 0 : index
    %c0_11 = arith.constant 0 : index
    %8 = vector.load %arg2[%c0_9, %c0_10, %c0_11] : memref<1x8x8xf32, #tpu.memory_space<vmem>>, vector<1x8x8xf32>
    %9 = vector.shape_cast %8 : vector<1x8x8xf32> to vector<8x8xf32>
    %cst_12 = arith.constant dense<0.000000e+00> : vector<8x128xf32>
    %10 = tpu.matmul %9, %1, %cst_12 {dimension_numbers = #tpu.dot_dimension_numbers<[1], [0], [0], [1], [0, 0, 1, 1], [], []>} : vector<8x8xf32>, vector<8x128xf32>, vector<8x128xf32> -> vector<8x128xf32>
    %c0_13 = arith.constant 0 : index
    %c0_14 = arith.constant 0 : index
    %c0_15 = arith.constant 0 : index
    %11 = vector.load %arg4[%c0_13, %c0_14, %c0_15] : memref<1x1x128xf32, #tpu.memory_space<vmem>>, vector<1x1x128xf32>
    %12 = vector.shape_cast %11 : vector<1x1x128xf32> to vector<1x128xf32>
    %13 = vector.broadcast %12 : vector<1x128xf32> to vector<8x128xf32>
    %14 = arith.mulf %10, %13 : vector<8x128xf32>
    %cst_16 = arith.constant dense<0.000000e+00> : vector<8x128xf32>
    %15 = tpu.matmul %14, %3, %cst_16 {dimension_numbers = #tpu.dot_dimension_numbers<[1], [0], [0], [1], [0, 0, 1, 1], [], []>} : vector<8x128xf32>, vector<128x128xf32>, vector<8x128xf32> -> vector<8x128xf32>
    %16 = arith.addf %7, %15 : vector<8x128xf32>
    %cst_17 = arith.constant 0.000000e+00 : f32
    %17 = vector.broadcast %cst_17 : f32 to vector<8x128xf32>
    %18 = arith.maximumf %16, %17 : vector<8x128xf32>
    %cst_18 = arith.constant dense<0.000000e+00> : vector<8x128xf32>
    %19 = tpu.matmul %1, %2, %cst_18 {dimension_numbers = #tpu.dot_dimension_numbers<[1], [0], [0], [1], [0, 0, 1, 1], [], []>} : vector<8x128xf32>, vector<128x128xf32>, vector<8x128xf32> -> vector<8x128xf32>
    %20 = vector.broadcast %4 : vector<1x128xf32> to vector<8x128xf32>
    %21 = arith.addf %19, %20 : vector<8x128xf32>
    %c0_19 = arith.constant 0 : index
    %c0_20 = arith.constant 0 : index
    %c0_21 = arith.constant 0 : index
    %22 = vector.load %arg3[%c0_19, %c0_20, %c0_21] : memref<17x8x8xf32, #tpu.memory_space<vmem>>, vector<1x8x8xf32>
    %23 = vector.shape_cast %22 : vector<1x8x8xf32> to vector<8x8xf32>
    %cst_22 = arith.constant dense<0.000000e+00> : vector<8x128xf32>
    %24 = tpu.matmul %23, %0, %cst_22 {dimension_numbers = #tpu.dot_dimension_numbers<[1], [0], [0], [1], [0, 0, 1, 1], [], []>} : vector<8x8xf32>, vector<8x128xf32>, vector<8x128xf32> -> vector<8x128xf32>
    %c0_23 = arith.constant 0 : index
    %c0_24 = arith.constant 0 : index
    %c0_25 = arith.constant 0 : index
    %25 = vector.load %arg5[%c0_23, %c0_24, %c0_25] : memref<17x1x128xf32, #tpu.memory_space<vmem>>, vector<1x1x128xf32>
    %26 = vector.shape_cast %25 : vector<1x1x128xf32> to vector<1x128xf32>
    %27 = vector.broadcast %26 : vector<1x128xf32> to vector<8x128xf32>
    %28 = arith.mulf %24, %27 : vector<8x128xf32>
    %c1 = arith.constant 1 : index
    %c0_26 = arith.constant 0 : index
    %c0_27 = arith.constant 0 : index
    %29 = vector.load %arg3[%c1, %c0_26, %c0_27] : memref<17x8x8xf32, #tpu.memory_space<vmem>>, vector<1x8x8xf32>
    %30 = vector.shape_cast %29 : vector<1x8x8xf32> to vector<8x8xf32>
    %cst_28 = arith.constant dense<0.000000e+00> : vector<8x128xf32>
    %31 = tpu.matmul %30, %0, %cst_28 {dimension_numbers = #tpu.dot_dimension_numbers<[1], [0], [0], [1], [0, 0, 1, 1], [], []>} : vector<8x8xf32>, vector<8x128xf32>, vector<8x128xf32> -> vector<8x128xf32>
    %c1_29 = arith.constant 1 : index
    %c0_30 = arith.constant 0 : index
    %c0_31 = arith.constant 0 : index
    %32 = vector.load %arg5[%c1_29, %c0_30, %c0_31] : memref<17x1x128xf32, #tpu.memory_space<vmem>>, vector<1x1x128xf32>
    %33 = vector.shape_cast %32 : vector<1x1x128xf32> to vector<1x128xf32>
    %34 = vector.broadcast %33 : vector<1x128xf32> to vector<8x128xf32>
    %35 = arith.mulf %31, %34 : vector<8x128xf32>
    %36 = arith.addf %28, %35 : vector<8x128xf32>
    %c2 = arith.constant 2 : index
    %c0_32 = arith.constant 0 : index
    %c0_33 = arith.constant 0 : index
    %37 = vector.load %arg3[%c2, %c0_32, %c0_33] : memref<17x8x8xf32, #tpu.memory_space<vmem>>, vector<1x8x8xf32>
    %38 = vector.shape_cast %37 : vector<1x8x8xf32> to vector<8x8xf32>
    %cst_34 = arith.constant dense<0.000000e+00> : vector<8x128xf32>
    %39 = tpu.matmul %38, %0, %cst_34 {dimension_numbers = #tpu.dot_dimension_numbers<[1], [0], [0], [1], [0, 0, 1, 1], [], []>} : vector<8x8xf32>, vector<8x128xf32>, vector<8x128xf32> -> vector<8x128xf32>
    %c2_35 = arith.constant 2 : index
    %c0_36 = arith.constant 0 : index
    %c0_37 = arith.constant 0 : index
    %40 = vector.load %arg5[%c2_35, %c0_36, %c0_37] : memref<17x1x128xf32, #tpu.memory_space<vmem>>, vector<1x1x128xf32>
    %41 = vector.shape_cast %40 : vector<1x1x128xf32> to vector<1x128xf32>
    %42 = vector.broadcast %41 : vector<1x128xf32> to vector<8x128xf32>
    %43 = arith.mulf %39, %42 : vector<8x128xf32>
    %44 = arith.addf %36, %43 : vector<8x128xf32>
    %c3 = arith.constant 3 : index
    %c0_38 = arith.constant 0 : index
    %c0_39 = arith.constant 0 : index
    %45 = vector.load %arg3[%c3, %c0_38, %c0_39] : memref<17x8x8xf32, #tpu.memory_space<vmem>>, vector<1x8x8xf32>
    %46 = vector.shape_cast %45 : vector<1x8x8xf32> to vector<8x8xf32>
    %cst_40 = arith.constant dense<0.000000e+00> : vector<8x128xf32>
    %47 = tpu.matmul %46, %0, %cst_40 {dimension_numbers = #tpu.dot_dimension_numbers<[1], [0], [0], [1], [0, 0, 1, 1], [], []>} : vector<8x8xf32>, vector<8x128xf32>, vector<8x128xf32> -> vector<8x128xf32>
    %c3_41 = arith.constant 3 : index
    %c0_42 = arith.constant 0 : index
    %c0_43 = arith.constant 0 : index
    %48 = vector.load %arg5[%c3_41, %c0_42, %c0_43] : memref<17x1x128xf32, #tpu.memory_space<vmem>>, vector<1x1x128xf32>
    %49 = vector.shape_cast %48 : vector<1x1x128xf32> to vector<1x128xf32>
    %50 = vector.broadcast %49 : vector<1x128xf32> to vector<8x128xf32>
    %51 = arith.mulf %47, %50 : vector<8x128xf32>
    %52 = arith.addf %44, %51 : vector<8x128xf32>
    %c4 = arith.constant 4 : index
    %c0_44 = arith.constant 0 : index
    %c0_45 = arith.constant 0 : index
    %53 = vector.load %arg3[%c4, %c0_44, %c0_45] : memref<17x8x8xf32, #tpu.memory_space<vmem>>, vector<1x8x8xf32>
    %54 = vector.shape_cast %53 : vector<1x8x8xf32> to vector<8x8xf32>
    %cst_46 = arith.constant dense<0.000000e+00> : vector<8x128xf32>
    %55 = tpu.matmul %54, %0, %cst_46 {dimension_numbers = #tpu.dot_dimension_numbers<[1], [0], [0], [1], [0, 0, 1, 1], [], []>} : vector<8x8xf32>, vector<8x128xf32>, vector<8x128xf32> -> vector<8x128xf32>
    %c4_47 = arith.constant 4 : index
    %c0_48 = arith.constant 0 : index
    %c0_49 = arith.constant 0 : index
    %56 = vector.load %arg5[%c4_47, %c0_48, %c0_49] : memref<17x1x128xf32, #tpu.memory_space<vmem>>, vector<1x1x128xf32>
    %57 = vector.shape_cast %56 : vector<1x1x128xf32> to vector<1x128xf32>
    %58 = vector.broadcast %57 : vector<1x128xf32> to vector<8x128xf32>
    %59 = arith.mulf %55, %58 : vector<8x128xf32>
    %60 = arith.addf %52, %59 : vector<8x128xf32>
    %c5 = arith.constant 5 : index
    %c0_50 = arith.constant 0 : index
    %c0_51 = arith.constant 0 : index
    %61 = vector.load %arg3[%c5, %c0_50, %c0_51] : memref<17x8x8xf32, #tpu.memory_space<vmem>>, vector<1x8x8xf32>
    %62 = vector.shape_cast %61 : vector<1x8x8xf32> to vector<8x8xf32>
    %cst_52 = arith.constant dense<0.000000e+00> : vector<8x128xf32>
    %63 = tpu.matmul %62, %0, %cst_52 {dimension_numbers = #tpu.dot_dimension_numbers<[1], [0], [0], [1], [0, 0, 1, 1], [], []>} : vector<8x8xf32>, vector<8x128xf32>, vector<8x128xf32> -> vector<8x128xf32>
    %c5_53 = arith.constant 5 : index
    %c0_54 = arith.constant 0 : index
    %c0_55 = arith.constant 0 : index
    %64 = vector.load %arg5[%c5_53, %c0_54, %c0_55] : memref<17x1x128xf32, #tpu.memory_space<vmem>>, vector<1x1x128xf32>
    %65 = vector.shape_cast %64 : vector<1x1x128xf32> to vector<1x128xf32>
    %66 = vector.broadcast %65 : vector<1x128xf32> to vector<8x128xf32>
    %67 = arith.mulf %63, %66 : vector<8x128xf32>
    %68 = arith.addf %60, %67 : vector<8x128xf32>
    %c6 = arith.constant 6 : index
    %c0_56 = arith.constant 0 : index
    %c0_57 = arith.constant 0 : index
    %69 = vector.load %arg3[%c6, %c0_56, %c0_57] : memref<17x8x8xf32, #tpu.memory_space<vmem>>, vector<1x8x8xf32>
    %70 = vector.shape_cast %69 : vector<1x8x8xf32> to vector<8x8xf32>
    %cst_58 = arith.constant dense<0.000000e+00> : vector<8x128xf32>
    %71 = tpu.matmul %70, %0, %cst_58 {dimension_numbers = #tpu.dot_dimension_numbers<[1], [0], [0], [1], [0, 0, 1, 1], [], []>} : vector<8x8xf32>, vector<8x128xf32>, vector<8x128xf32> -> vector<8x128xf32>
    %c6_59 = arith.constant 6 : index
    %c0_60 = arith.constant 0 : index
    %c0_61 = arith.constant 0 : index
    %72 = vector.load %arg5[%c6_59, %c0_60, %c0_61] : memref<17x1x128xf32, #tpu.memory_space<vmem>>, vector<1x1x128xf32>
    %73 = vector.shape_cast %72 : vector<1x1x128xf32> to vector<1x128xf32>
    %74 = vector.broadcast %73 : vector<1x128xf32> to vector<8x128xf32>
    %75 = arith.mulf %71, %74 : vector<8x128xf32>
    %76 = arith.addf %68, %75 : vector<8x128xf32>
    %c7 = arith.constant 7 : index
    %c0_62 = arith.constant 0 : index
    %c0_63 = arith.constant 0 : index
    %77 = vector.load %arg3[%c7, %c0_62, %c0_63] : memref<17x8x8xf32, #tpu.memory_space<vmem>>, vector<1x8x8xf32>
    %78 = vector.shape_cast %77 : vector<1x8x8xf32> to vector<8x8xf32>
    %cst_64 = arith.constant dense<0.000000e+00> : vector<8x128xf32>
    %79 = tpu.matmul %78, %0, %cst_64 {dimension_numbers = #tpu.dot_dimension_numbers<[1], [0], [0], [1], [0, 0, 1, 1], [], []>} : vector<8x8xf32>, vector<8x128xf32>, vector<8x128xf32> -> vector<8x128xf32>
    %c7_65 = arith.constant 7 : index
    %c0_66 = arith.constant 0 : index
    %c0_67 = arith.constant 0 : index
    %80 = vector.load %arg5[%c7_65, %c0_66, %c0_67] : memref<17x1x128xf32, #tpu.memory_space<vmem>>, vector<1x1x128xf32>
    %81 = vector.shape_cast %80 : vector<1x1x128xf32> to vector<1x128xf32>
    %82 = vector.broadcast %81 : vector<1x128xf32> to vector<8x128xf32>
    %83 = arith.mulf %79, %82 : vector<8x128xf32>
    %84 = arith.addf %76, %83 : vector<8x128xf32>
    %c8 = arith.constant 8 : index
    %c0_68 = arith.constant 0 : index
    %c0_69 = arith.constant 0 : index
    %85 = vector.load %arg3[%c8, %c0_68, %c0_69] : memref<17x8x8xf32, #tpu.memory_space<vmem>>, vector<1x8x8xf32>
    %86 = vector.shape_cast %85 : vector<1x8x8xf32> to vector<8x8xf32>
    %cst_70 = arith.constant dense<0.000000e+00> : vector<8x128xf32>
    %87 = tpu.matmul %86, %0, %cst_70 {dimension_numbers = #tpu.dot_dimension_numbers<[1], [0], [0], [1], [0, 0, 1, 1], [], []>} : vector<8x8xf32>, vector<8x128xf32>, vector<8x128xf32> -> vector<8x128xf32>
    %c8_71 = arith.constant 8 : index
    %c0_72 = arith.constant 0 : index
    %c0_73 = arith.constant 0 : index
    %88 = vector.load %arg5[%c8_71, %c0_72, %c0_73] : memref<17x1x128xf32, #tpu.memory_space<vmem>>, vector<1x1x128xf32>
    %89 = vector.shape_cast %88 : vector<1x1x128xf32> to vector<1x128xf32>
    %90 = vector.broadcast %89 : vector<1x128xf32> to vector<8x128xf32>
    %91 = arith.mulf %87, %90 : vector<8x128xf32>
    %92 = arith.addf %84, %91 : vector<8x128xf32>
    %c9 = arith.constant 9 : index
    %c0_74 = arith.constant 0 : index
    %c0_75 = arith.constant 0 : index
    %93 = vector.load %arg3[%c9, %c0_74, %c0_75] : memref<17x8x8xf32, #tpu.memory_space<vmem>>, vector<1x8x8xf32>
    %94 = vector.shape_cast %93 : vector<1x8x8xf32> to vector<8x8xf32>
    %cst_76 = arith.constant dense<0.000000e+00> : vector<8x128xf32>
    %95 = tpu.matmul %94, %0, %cst_76 {dimension_numbers = #tpu.dot_dimension_numbers<[1], [0], [0], [1], [0, 0, 1, 1], [], []>} : vector<8x8xf32>, vector<8x128xf32>, vector<8x128xf32> -> vector<8x128xf32>
    %c9_77 = arith.constant 9 : index
    %c0_78 = arith.constant 0 : index
    %c0_79 = arith.constant 0 : index
    %96 = vector.load %arg5[%c9_77, %c0_78, %c0_79] : memref<17x1x128xf32, #tpu.memory_space<vmem>>, vector<1x1x128xf32>
    %97 = vector.shape_cast %96 : vector<1x1x128xf32> to vector<1x128xf32>
    %98 = vector.broadcast %97 : vector<1x128xf32> to vector<8x128xf32>
    %99 = arith.mulf %95, %98 : vector<8x128xf32>
    %100 = arith.addf %92, %99 : vector<8x128xf32>
    %c10 = arith.constant 10 : index
    %c0_80 = arith.constant 0 : index
    %c0_81 = arith.constant 0 : index
    %101 = vector.load %arg3[%c10, %c0_80, %c0_81] : memref<17x8x8xf32, #tpu.memory_space<vmem>>, vector<1x8x8xf32>
    %102 = vector.shape_cast %101 : vector<1x8x8xf32> to vector<8x8xf32>
    %cst_82 = arith.constant dense<0.000000e+00> : vector<8x128xf32>
    %103 = tpu.matmul %102, %0, %cst_82 {dimension_numbers = #tpu.dot_dimension_numbers<[1], [0], [0], [1], [0, 0, 1, 1], [], []>} : vector<8x8xf32>, vector<8x128xf32>, vector<8x128xf32> -> vector<8x128xf32>
    %c10_83 = arith.constant 10 : index
    %c0_84 = arith.constant 0 : index
    %c0_85 = arith.constant 0 : index
    %104 = vector.load %arg5[%c10_83, %c0_84, %c0_85] : memref<17x1x128xf32, #tpu.memory_space<vmem>>, vector<1x1x128xf32>
    %105 = vector.shape_cast %104 : vector<1x1x128xf32> to vector<1x128xf32>
    %106 = vector.broadcast %105 : vector<1x128xf32> to vector<8x128xf32>
    %107 = arith.mulf %103, %106 : vector<8x128xf32>
    %108 = arith.addf %100, %107 : vector<8x128xf32>
    %c11 = arith.constant 11 : index
    %c0_86 = arith.constant 0 : index
    %c0_87 = arith.constant 0 : index
    %109 = vector.load %arg3[%c11, %c0_86, %c0_87] : memref<17x8x8xf32, #tpu.memory_space<vmem>>, vector<1x8x8xf32>
    %110 = vector.shape_cast %109 : vector<1x8x8xf32> to vector<8x8xf32>
    %cst_88 = arith.constant dense<0.000000e+00> : vector<8x128xf32>
    %111 = tpu.matmul %110, %0, %cst_88 {dimension_numbers = #tpu.dot_dimension_numbers<[1], [0], [0], [1], [0, 0, 1, 1], [], []>} : vector<8x8xf32>, vector<8x128xf32>, vector<8x128xf32> -> vector<8x128xf32>
    %c11_89 = arith.constant 11 : index
    %c0_90 = arith.constant 0 : index
    %c0_91 = arith.constant 0 : index
    %112 = vector.load %arg5[%c11_89, %c0_90, %c0_91] : memref<17x1x128xf32, #tpu.memory_space<vmem>>, vector<1x1x128xf32>
    %113 = vector.shape_cast %112 : vector<1x1x128xf32> to vector<1x128xf32>
    %114 = vector.broadcast %113 : vector<1x128xf32> to vector<8x128xf32>
    %115 = arith.mulf %111, %114 : vector<8x128xf32>
    %116 = arith.addf %108, %115 : vector<8x128xf32>
    %c12 = arith.constant 12 : index
    %c0_92 = arith.constant 0 : index
    %c0_93 = arith.constant 0 : index
    %117 = vector.load %arg3[%c12, %c0_92, %c0_93] : memref<17x8x8xf32, #tpu.memory_space<vmem>>, vector<1x8x8xf32>
    %118 = vector.shape_cast %117 : vector<1x8x8xf32> to vector<8x8xf32>
    %cst_94 = arith.constant dense<0.000000e+00> : vector<8x128xf32>
    %119 = tpu.matmul %118, %0, %cst_94 {dimension_numbers = #tpu.dot_dimension_numbers<[1], [0], [0], [1], [0, 0, 1, 1], [], []>} : vector<8x8xf32>, vector<8x128xf32>, vector<8x128xf32> -> vector<8x128xf32>
    %c12_95 = arith.constant 12 : index
    %c0_96 = arith.constant 0 : index
    %c0_97 = arith.constant 0 : index
    %120 = vector.load %arg5[%c12_95, %c0_96, %c0_97] : memref<17x1x128xf32, #tpu.memory_space<vmem>>, vector<1x1x128xf32>
    %121 = vector.shape_cast %120 : vector<1x1x128xf32> to vector<1x128xf32>
    %122 = vector.broadcast %121 : vector<1x128xf32> to vector<8x128xf32>
    %123 = arith.mulf %119, %122 : vector<8x128xf32>
    %124 = arith.addf %116, %123 : vector<8x128xf32>
    %c13 = arith.constant 13 : index
    %c0_98 = arith.constant 0 : index
    %c0_99 = arith.constant 0 : index
    %125 = vector.load %arg3[%c13, %c0_98, %c0_99] : memref<17x8x8xf32, #tpu.memory_space<vmem>>, vector<1x8x8xf32>
    %126 = vector.shape_cast %125 : vector<1x8x8xf32> to vector<8x8xf32>
    %cst_100 = arith.constant dense<0.000000e+00> : vector<8x128xf32>
    %127 = tpu.matmul %126, %0, %cst_100 {dimension_numbers = #tpu.dot_dimension_numbers<[1], [0], [0], [1], [0, 0, 1, 1], [], []>} : vector<8x8xf32>, vector<8x128xf32>, vector<8x128xf32> -> vector<8x128xf32>
    %c13_101 = arith.constant 13 : index
    %c0_102 = arith.constant 0 : index
    %c0_103 = arith.constant 0 : index
    %128 = vector.load %arg5[%c13_101, %c0_102, %c0_103] : memref<17x1x128xf32, #tpu.memory_space<vmem>>, vector<1x1x128xf32>
    %129 = vector.shape_cast %128 : vector<1x1x128xf32> to vector<1x128xf32>
    %130 = vector.broadcast %129 : vector<1x128xf32> to vector<8x128xf32>
    %131 = arith.mulf %127, %130 : vector<8x128xf32>
    %132 = arith.addf %124, %131 : vector<8x128xf32>
    %c14 = arith.constant 14 : index
    %c0_104 = arith.constant 0 : index
    %c0_105 = arith.constant 0 : index
    %133 = vector.load %arg3[%c14, %c0_104, %c0_105] : memref<17x8x8xf32, #tpu.memory_space<vmem>>, vector<1x8x8xf32>
    %134 = vector.shape_cast %133 : vector<1x8x8xf32> to vector<8x8xf32>
    %cst_106 = arith.constant dense<0.000000e+00> : vector<8x128xf32>
    %135 = tpu.matmul %134, %0, %cst_106 {dimension_numbers = #tpu.dot_dimension_numbers<[1], [0], [0], [1], [0, 0, 1, 1], [], []>} : vector<8x8xf32>, vector<8x128xf32>, vector<8x128xf32> -> vector<8x128xf32>
    %c14_107 = arith.constant 14 : index
    %c0_108 = arith.constant 0 : index
    %c0_109 = arith.constant 0 : index
    %136 = vector.load %arg5[%c14_107, %c0_108, %c0_109] : memref<17x1x128xf32, #tpu.memory_space<vmem>>, vector<1x1x128xf32>
    %137 = vector.shape_cast %136 : vector<1x1x128xf32> to vector<1x128xf32>
    %138 = vector.broadcast %137 : vector<1x128xf32> to vector<8x128xf32>
    %139 = arith.mulf %135, %138 : vector<8x128xf32>
    %140 = arith.addf %132, %139 : vector<8x128xf32>
    %c15 = arith.constant 15 : index
    %c0_110 = arith.constant 0 : index
    %c0_111 = arith.constant 0 : index
    %141 = vector.load %arg3[%c15, %c0_110, %c0_111] : memref<17x8x8xf32, #tpu.memory_space<vmem>>, vector<1x8x8xf32>
    %142 = vector.shape_cast %141 : vector<1x8x8xf32> to vector<8x8xf32>
    %cst_112 = arith.constant dense<0.000000e+00> : vector<8x128xf32>
    %143 = tpu.matmul %142, %0, %cst_112 {dimension_numbers = #tpu.dot_dimension_numbers<[1], [0], [0], [1], [0, 0, 1, 1], [], []>} : vector<8x8xf32>, vector<8x128xf32>, vector<8x128xf32> -> vector<8x128xf32>
    %c15_113 = arith.constant 15 : index
    %c0_114 = arith.constant 0 : index
    %c0_115 = arith.constant 0 : index
    %144 = vector.load %arg5[%c15_113, %c0_114, %c0_115] : memref<17x1x128xf32, #tpu.memory_space<vmem>>, vector<1x1x128xf32>
    %145 = vector.shape_cast %144 : vector<1x1x128xf32> to vector<1x128xf32>
    %146 = vector.broadcast %145 : vector<1x128xf32> to vector<8x128xf32>
    %147 = arith.mulf %143, %146 : vector<8x128xf32>
    %148 = arith.addf %140, %147 : vector<8x128xf32>
    %c16 = arith.constant 16 : index
    %c0_116 = arith.constant 0 : index
    %c0_117 = arith.constant 0 : index
    %149 = vector.load %arg3[%c16, %c0_116, %c0_117] : memref<17x8x8xf32, #tpu.memory_space<vmem>>, vector<1x8x8xf32>
    %150 = vector.shape_cast %149 : vector<1x8x8xf32> to vector<8x8xf32>
    %cst_118 = arith.constant dense<0.000000e+00> : vector<8x128xf32>
    %151 = tpu.matmul %150, %0, %cst_118 {dimension_numbers = #tpu.dot_dimension_numbers<[1], [0], [0], [1], [0, 0, 1, 1], [], []>} : vector<8x8xf32>, vector<8x128xf32>, vector<8x128xf32> -> vector<8x128xf32>
    %c16_119 = arith.constant 16 : index
    %c0_120 = arith.constant 0 : index
    %c0_121 = arith.constant 0 : index
    %152 = vector.load %arg5[%c16_119, %c0_120, %c0_121] : memref<17x1x128xf32, #tpu.memory_space<vmem>>, vector<1x1x128xf32>
    %153 = vector.shape_cast %152 : vector<1x1x128xf32> to vector<1x128xf32>
    %154 = vector.broadcast %153 : vector<1x128xf32> to vector<8x128xf32>
    %155 = arith.mulf %151, %154 : vector<8x128xf32>
    %156 = arith.addf %148, %155 : vector<8x128xf32>
    %cst_122 = arith.constant dense<0.000000e+00> : vector<8x128xf32>
    %157 = tpu.matmul %156, %3, %cst_122 {dimension_numbers = #tpu.dot_dimension_numbers<[1], [0], [0], [1], [0, 0, 1, 1], [], []>} : vector<8x128xf32>, vector<128x128xf32>, vector<8x128xf32> -> vector<8x128xf32>
    %158 = arith.addf %21, %157 : vector<8x128xf32>
    %cst_123 = arith.constant 0.000000e+00 : f32
    %159 = vector.broadcast %cst_123 : f32 to vector<8x128xf32>
    %160 = arith.maximumf %158, %159 : vector<8x128xf32>
    %c0_124 = arith.constant 0 : index
    %c0_125 = arith.constant 0 : index
    %161 = vector.load %arg11[%c0_124, %c0_125] : memref<128x128xf32, #tpu.memory_space<vmem>>, vector<128x128xf32>
    %c0_126 = arith.constant 0 : index
    %c0_127 = arith.constant 0 : index
    %162 = vector.load %arg12[%c0_126, %c0_127] : memref<128x128xf32, #tpu.memory_space<vmem>>, vector<128x128xf32>
    %c0_128 = arith.constant 0 : index
    %c0_129 = arith.constant 0 : index
    %163 = vector.load %arg13[%c0_128, %c0_129] : memref<1x128xf32, #tpu.memory_space<vmem>>, vector<1x128xf32>
    %cst_130 = arith.constant dense<0.000000e+00> : vector<8x128xf32>
    %164 = tpu.matmul %18, %161, %cst_130 {dimension_numbers = #tpu.dot_dimension_numbers<[1], [0], [0], [1], [0, 0, 1, 1], [], []>} : vector<8x128xf32>, vector<128x128xf32>, vector<8x128xf32> -> vector<8x128xf32>
    %165 = vector.broadcast %163 : vector<1x128xf32> to vector<8x128xf32>
    %166 = arith.addf %164, %165 : vector<8x128xf32>
    %c0_131 = arith.constant 0 : index
    %c0_132 = arith.constant 0 : index
    %c0_133 = arith.constant 0 : index
    %167 = vector.load %arg2[%c0_131, %c0_132, %c0_133] : memref<1x8x8xf32, #tpu.memory_space<vmem>>, vector<1x8x8xf32>
    %168 = vector.shape_cast %167 : vector<1x8x8xf32> to vector<8x8xf32>
    %cst_134 = arith.constant dense<0.000000e+00> : vector<8x128xf32>
    %169 = tpu.matmul %168, %160, %cst_134 {dimension_numbers = #tpu.dot_dimension_numbers<[1], [0], [0], [1], [0, 0, 1, 1], [], []>} : vector<8x8xf32>, vector<8x128xf32>, vector<8x128xf32> -> vector<8x128xf32>
    %c0_135 = arith.constant 0 : index
    %c0_136 = arith.constant 0 : index
    %c0_137 = arith.constant 0 : index
    %170 = vector.load %arg6[%c0_135, %c0_136, %c0_137] : memref<1x1x128xf32, #tpu.memory_space<vmem>>, vector<1x1x128xf32>
    %171 = vector.shape_cast %170 : vector<1x1x128xf32> to vector<1x128xf32>
    %172 = vector.broadcast %171 : vector<1x128xf32> to vector<8x128xf32>
    %173 = arith.mulf %169, %172 : vector<8x128xf32>
    %cst_138 = arith.constant dense<0.000000e+00> : vector<8x128xf32>
    %174 = tpu.matmul %173, %162, %cst_138 {dimension_numbers = #tpu.dot_dimension_numbers<[1], [0], [0], [1], [0, 0, 1, 1], [], []>} : vector<8x128xf32>, vector<128x128xf32>, vector<8x128xf32> -> vector<8x128xf32>
    %175 = arith.addf %166, %174 : vector<8x128xf32>
    %cst_139 = arith.constant dense<0.000000e+00> : vector<8x128xf32>
    %176 = tpu.matmul %160, %161, %cst_139 {dimension_numbers = #tpu.dot_dimension_numbers<[1], [0], [0], [1], [0, 0, 1, 1], [], []>} : vector<8x128xf32>, vector<128x128xf32>, vector<8x128xf32> -> vector<8x128xf32>
    %177 = vector.broadcast %163 : vector<1x128xf32> to vector<8x128xf32>
    %178 = arith.addf %176, %177 : vector<8x128xf32>
    %c0_140 = arith.constant 0 : index
    %c0_141 = arith.constant 0 : index
    %c0_142 = arith.constant 0 : index
    %179 = vector.load %arg3[%c0_140, %c0_141, %c0_142] : memref<17x8x8xf32, #tpu.memory_space<vmem>>, vector<1x8x8xf32>
    %180 = vector.shape_cast %179 : vector<1x8x8xf32> to vector<8x8xf32>
    %cst_143 = arith.constant dense<0.000000e+00> : vector<8x128xf32>
    %181 = tpu.matmul %180, %18, %cst_143 {dimension_numbers = #tpu.dot_dimension_numbers<[1], [0], [0], [1], [0, 0, 1, 1], [], []>} : vector<8x8xf32>, vector<8x128xf32>, vector<8x128xf32> -> vector<8x128xf32>
    %c0_144 = arith.constant 0 : index
    %c0_145 = arith.constant 0 : index
    %c0_146 = arith.constant 0 : index
    %182 = vector.load %arg7[%c0_144, %c0_145, %c0_146] : memref<17x1x128xf32, #tpu.memory_space<vmem>>, vector<1x1x128xf32>
    %183 = vector.shape_cast %182 : vector<1x1x128xf32> to vector<1x128xf32>
    %184 = vector.broadcast %183 : vector<1x128xf32> to vector<8x128xf32>
    %185 = arith.mulf %181, %184 : vector<8x128xf32>
    %c1_147 = arith.constant 1 : index
    %c0_148 = arith.constant 0 : index
    %c0_149 = arith.constant 0 : index
    %186 = vector.load %arg3[%c1_147, %c0_148, %c0_149] : memref<17x8x8xf32, #tpu.memory_space<vmem>>, vector<1x8x8xf32>
    %187 = vector.shape_cast %186 : vector<1x8x8xf32> to vector<8x8xf32>
    %cst_150 = arith.constant dense<0.000000e+00> : vector<8x128xf32>
    %188 = tpu.matmul %187, %18, %cst_150 {dimension_numbers = #tpu.dot_dimension_numbers<[1], [0], [0], [1], [0, 0, 1, 1], [], []>} : vector<8x8xf32>, vector<8x128xf32>, vector<8x128xf32> -> vector<8x128xf32>
    %c1_151 = arith.constant 1 : index
    %c0_152 = arith.constant 0 : index
    %c0_153 = arith.constant 0 : index
    %189 = vector.load %arg7[%c1_151, %c0_152, %c0_153] : memref<17x1x128xf32, #tpu.memory_space<vmem>>, vector<1x1x128xf32>
    %190 = vector.shape_cast %189 : vector<1x1x128xf32> to vector<1x128xf32>
    %191 = vector.broadcast %190 : vector<1x128xf32> to vector<8x128xf32>
    %192 = arith.mulf %188, %191 : vector<8x128xf32>
    %193 = arith.addf %185, %192 : vector<8x128xf32>
    %c2_154 = arith.constant 2 : index
    %c0_155 = arith.constant 0 : index
    %c0_156 = arith.constant 0 : index
    %194 = vector.load %arg3[%c2_154, %c0_155, %c0_156] : memref<17x8x8xf32, #tpu.memory_space<vmem>>, vector<1x8x8xf32>
    %195 = vector.shape_cast %194 : vector<1x8x8xf32> to vector<8x8xf32>
    %cst_157 = arith.constant dense<0.000000e+00> : vector<8x128xf32>
    %196 = tpu.matmul %195, %18, %cst_157 {dimension_numbers = #tpu.dot_dimension_numbers<[1], [0], [0], [1], [0, 0, 1, 1], [], []>} : vector<8x8xf32>, vector<8x128xf32>, vector<8x128xf32> -> vector<8x128xf32>
    %c2_158 = arith.constant 2 : index
    %c0_159 = arith.constant 0 : index
    %c0_160 = arith.constant 0 : index
    %197 = vector.load %arg7[%c2_158, %c0_159, %c0_160] : memref<17x1x128xf32, #tpu.memory_space<vmem>>, vector<1x1x128xf32>
    %198 = vector.shape_cast %197 : vector<1x1x128xf32> to vector<1x128xf32>
    %199 = vector.broadcast %198 : vector<1x128xf32> to vector<8x128xf32>
    %200 = arith.mulf %196, %199 : vector<8x128xf32>
    %201 = arith.addf %193, %200 : vector<8x128xf32>
    %c3_161 = arith.constant 3 : index
    %c0_162 = arith.constant 0 : index
    %c0_163 = arith.constant 0 : index
    %202 = vector.load %arg3[%c3_161, %c0_162, %c0_163] : memref<17x8x8xf32, #tpu.memory_space<vmem>>, vector<1x8x8xf32>
    %203 = vector.shape_cast %202 : vector<1x8x8xf32> to vector<8x8xf32>
    %cst_164 = arith.constant dense<0.000000e+00> : vector<8x128xf32>
    %204 = tpu.matmul %203, %18, %cst_164 {dimension_numbers = #tpu.dot_dimension_numbers<[1], [0], [0], [1], [0, 0, 1, 1], [], []>} : vector<8x8xf32>, vector<8x128xf32>, vector<8x128xf32> -> vector<8x128xf32>
    %c3_165 = arith.constant 3 : index
    %c0_166 = arith.constant 0 : index
    %c0_167 = arith.constant 0 : index
    %205 = vector.load %arg7[%c3_165, %c0_166, %c0_167] : memref<17x1x128xf32, #tpu.memory_space<vmem>>, vector<1x1x128xf32>
    %206 = vector.shape_cast %205 : vector<1x1x128xf32> to vector<1x128xf32>
    %207 = vector.broadcast %206 : vector<1x128xf32> to vector<8x128xf32>
    %208 = arith.mulf %204, %207 : vector<8x128xf32>
    %209 = arith.addf %201, %208 : vector<8x128xf32>
    %c4_168 = arith.constant 4 : index
    %c0_169 = arith.constant 0 : index
    %c0_170 = arith.constant 0 : index
    %210 = vector.load %arg3[%c4_168, %c0_169, %c0_170] : memref<17x8x8xf32, #tpu.memory_space<vmem>>, vector<1x8x8xf32>
    %211 = vector.shape_cast %210 : vector<1x8x8xf32> to vector<8x8xf32>
    %cst_171 = arith.constant dense<0.000000e+00> : vector<8x128xf32>
    %212 = tpu.matmul %211, %18, %cst_171 {dimension_numbers = #tpu.dot_dimension_numbers<[1], [0], [0], [1], [0, 0, 1, 1], [], []>} : vector<8x8xf32>, vector<8x128xf32>, vector<8x128xf32> -> vector<8x128xf32>
    %c4_172 = arith.constant 4 : index
    %c0_173 = arith.constant 0 : index
    %c0_174 = arith.constant 0 : index
    %213 = vector.load %arg7[%c4_172, %c0_173, %c0_174] : memref<17x1x128xf32, #tpu.memory_space<vmem>>, vector<1x1x128xf32>
    %214 = vector.shape_cast %213 : vector<1x1x128xf32> to vector<1x128xf32>
    %215 = vector.broadcast %214 : vector<1x128xf32> to vector<8x128xf32>
    %216 = arith.mulf %212, %215 : vector<8x128xf32>
    %217 = arith.addf %209, %216 : vector<8x128xf32>
    %c5_175 = arith.constant 5 : index
    %c0_176 = arith.constant 0 : index
    %c0_177 = arith.constant 0 : index
    %218 = vector.load %arg3[%c5_175, %c0_176, %c0_177] : memref<17x8x8xf32, #tpu.memory_space<vmem>>, vector<1x8x8xf32>
    %219 = vector.shape_cast %218 : vector<1x8x8xf32> to vector<8x8xf32>
    %cst_178 = arith.constant dense<0.000000e+00> : vector<8x128xf32>
    %220 = tpu.matmul %219, %18, %cst_178 {dimension_numbers = #tpu.dot_dimension_numbers<[1], [0], [0], [1], [0, 0, 1, 1], [], []>} : vector<8x8xf32>, vector<8x128xf32>, vector<8x128xf32> -> vector<8x128xf32>
    %c5_179 = arith.constant 5 : index
    %c0_180 = arith.constant 0 : index
    %c0_181 = arith.constant 0 : index
    %221 = vector.load %arg7[%c5_179, %c0_180, %c0_181] : memref<17x1x128xf32, #tpu.memory_space<vmem>>, vector<1x1x128xf32>
    %222 = vector.shape_cast %221 : vector<1x1x128xf32> to vector<1x128xf32>
    %223 = vector.broadcast %222 : vector<1x128xf32> to vector<8x128xf32>
    %224 = arith.mulf %220, %223 : vector<8x128xf32>
    %225 = arith.addf %217, %224 : vector<8x128xf32>
    %c6_182 = arith.constant 6 : index
    %c0_183 = arith.constant 0 : index
    %c0_184 = arith.constant 0 : index
    %226 = vector.load %arg3[%c6_182, %c0_183, %c0_184] : memref<17x8x8xf32, #tpu.memory_space<vmem>>, vector<1x8x8xf32>
    %227 = vector.shape_cast %226 : vector<1x8x8xf32> to vector<8x8xf32>
    %cst_185 = arith.constant dense<0.000000e+00> : vector<8x128xf32>
    %228 = tpu.matmul %227, %18, %cst_185 {dimension_numbers = #tpu.dot_dimension_numbers<[1], [0], [0], [1], [0, 0, 1, 1], [], []>} : vector<8x8xf32>, vector<8x128xf32>, vector<8x128xf32> -> vector<8x128xf32>
    %c6_186 = arith.constant 6 : index
    %c0_187 = arith.constant 0 : index
    %c0_188 = arith.constant 0 : index
    %229 = vector.load %arg7[%c6_186, %c0_187, %c0_188] : memref<17x1x128xf32, #tpu.memory_space<vmem>>, vector<1x1x128xf32>
    %230 = vector.shape_cast %229 : vector<1x1x128xf32> to vector<1x128xf32>
    %231 = vector.broadcast %230 : vector<1x128xf32> to vector<8x128xf32>
    %232 = arith.mulf %228, %231 : vector<8x128xf32>
    %233 = arith.addf %225, %232 : vector<8x128xf32>
    %c7_189 = arith.constant 7 : index
    %c0_190 = arith.constant 0 : index
    %c0_191 = arith.constant 0 : index
    %234 = vector.load %arg3[%c7_189, %c0_190, %c0_191] : memref<17x8x8xf32, #tpu.memory_space<vmem>>, vector<1x8x8xf32>
    %235 = vector.shape_cast %234 : vector<1x8x8xf32> to vector<8x8xf32>
    %cst_192 = arith.constant dense<0.000000e+00> : vector<8x128xf32>
    %236 = tpu.matmul %235, %18, %cst_192 {dimension_numbers = #tpu.dot_dimension_numbers<[1], [0], [0], [1], [0, 0, 1, 1], [], []>} : vector<8x8xf32>, vector<8x128xf32>, vector<8x128xf32> -> vector<8x128xf32>
    %c7_193 = arith.constant 7 : index
    %c0_194 = arith.constant 0 : index
    %c0_195 = arith.constant 0 : index
    %237 = vector.load %arg7[%c7_193, %c0_194, %c0_195] : memref<17x1x128xf32, #tpu.memory_space<vmem>>, vector<1x1x128xf32>
    %238 = vector.shape_cast %237 : vector<1x1x128xf32> to vector<1x128xf32>
    %239 = vector.broadcast %238 : vector<1x128xf32> to vector<8x128xf32>
    %240 = arith.mulf %236, %239 : vector<8x128xf32>
    %241 = arith.addf %233, %240 : vector<8x128xf32>
    %c8_196 = arith.constant 8 : index
    %c0_197 = arith.constant 0 : index
    %c0_198 = arith.constant 0 : index
    %242 = vector.load %arg3[%c8_196, %c0_197, %c0_198] : memref<17x8x8xf32, #tpu.memory_space<vmem>>, vector<1x8x8xf32>
    %243 = vector.shape_cast %242 : vector<1x8x8xf32> to vector<8x8xf32>
    %cst_199 = arith.constant dense<0.000000e+00> : vector<8x128xf32>
    %244 = tpu.matmul %243, %18, %cst_199 {dimension_numbers = #tpu.dot_dimension_numbers<[1], [0], [0], [1], [0, 0, 1, 1], [], []>} : vector<8x8xf32>, vector<8x128xf32>, vector<8x128xf32> -> vector<8x128xf32>
    %c8_200 = arith.constant 8 : index
    %c0_201 = arith.constant 0 : index
    %c0_202 = arith.constant 0 : index
    %245 = vector.load %arg7[%c8_200, %c0_201, %c0_202] : memref<17x1x128xf32, #tpu.memory_space<vmem>>, vector<1x1x128xf32>
    %246 = vector.shape_cast %245 : vector<1x1x128xf32> to vector<1x128xf32>
    %247 = vector.broadcast %246 : vector<1x128xf32> to vector<8x128xf32>
    %248 = arith.mulf %244, %247 : vector<8x128xf32>
    %249 = arith.addf %241, %248 : vector<8x128xf32>
    %c9_203 = arith.constant 9 : index
    %c0_204 = arith.constant 0 : index
    %c0_205 = arith.constant 0 : index
    %250 = vector.load %arg3[%c9_203, %c0_204, %c0_205] : memref<17x8x8xf32, #tpu.memory_space<vmem>>, vector<1x8x8xf32>
    %251 = vector.shape_cast %250 : vector<1x8x8xf32> to vector<8x8xf32>
    %cst_206 = arith.constant dense<0.000000e+00> : vector<8x128xf32>
    %252 = tpu.matmul %251, %18, %cst_206 {dimension_numbers = #tpu.dot_dimension_numbers<[1], [0], [0], [1], [0, 0, 1, 1], [], []>} : vector<8x8xf32>, vector<8x128xf32>, vector<8x128xf32> -> vector<8x128xf32>
    %c9_207 = arith.constant 9 : index
    %c0_208 = arith.constant 0 : index
    %c0_209 = arith.constant 0 : index
    %253 = vector.load %arg7[%c9_207, %c0_208, %c0_209] : memref<17x1x128xf32, #tpu.memory_space<vmem>>, vector<1x1x128xf32>
    %254 = vector.shape_cast %253 : vector<1x1x128xf32> to vector<1x128xf32>
    %255 = vector.broadcast %254 : vector<1x128xf32> to vector<8x128xf32>
    %256 = arith.mulf %252, %255 : vector<8x128xf32>
    %257 = arith.addf %249, %256 : vector<8x128xf32>
    %c10_210 = arith.constant 10 : index
    %c0_211 = arith.constant 0 : index
    %c0_212 = arith.constant 0 : index
    %258 = vector.load %arg3[%c10_210, %c0_211, %c0_212] : memref<17x8x8xf32, #tpu.memory_space<vmem>>, vector<1x8x8xf32>
    %259 = vector.shape_cast %258 : vector<1x8x8xf32> to vector<8x8xf32>
    %cst_213 = arith.constant dense<0.000000e+00> : vector<8x128xf32>
    %260 = tpu.matmul %259, %18, %cst_213 {dimension_numbers = #tpu.dot_dimension_numbers<[1], [0], [0], [1], [0, 0, 1, 1], [], []>} : vector<8x8xf32>, vector<8x128xf32>, vector<8x128xf32> -> vector<8x128xf32>
    %c10_214 = arith.constant 10 : index
    %c0_215 = arith.constant 0 : index
    %c0_216 = arith.constant 0 : index
    %261 = vector.load %arg7[%c10_214, %c0_215, %c0_216] : memref<17x1x128xf32, #tpu.memory_space<vmem>>, vector<1x1x128xf32>
    %262 = vector.shape_cast %261 : vector<1x1x128xf32> to vector<1x128xf32>
    %263 = vector.broadcast %262 : vector<1x128xf32> to vector<8x128xf32>
    %264 = arith.mulf %260, %263 : vector<8x128xf32>
    %265 = arith.addf %257, %264 : vector<8x128xf32>
    %c11_217 = arith.constant 11 : index
    %c0_218 = arith.constant 0 : index
    %c0_219 = arith.constant 0 : index
    %266 = vector.load %arg3[%c11_217, %c0_218, %c0_219] : memref<17x8x8xf32, #tpu.memory_space<vmem>>, vector<1x8x8xf32>
    %267 = vector.shape_cast %266 : vector<1x8x8xf32> to vector<8x8xf32>
    %cst_220 = arith.constant dense<0.000000e+00> : vector<8x128xf32>
    %268 = tpu.matmul %267, %18, %cst_220 {dimension_numbers = #tpu.dot_dimension_numbers<[1], [0], [0], [1], [0, 0, 1, 1], [], []>} : vector<8x8xf32>, vector<8x128xf32>, vector<8x128xf32> -> vector<8x128xf32>
    %c11_221 = arith.constant 11 : index
    %c0_222 = arith.constant 0 : index
    %c0_223 = arith.constant 0 : index
    %269 = vector.load %arg7[%c11_221, %c0_222, %c0_223] : memref<17x1x128xf32, #tpu.memory_space<vmem>>, vector<1x1x128xf32>
    %270 = vector.shape_cast %269 : vector<1x1x128xf32> to vector<1x128xf32>
    %271 = vector.broadcast %270 : vector<1x128xf32> to vector<8x128xf32>
    %272 = arith.mulf %268, %271 : vector<8x128xf32>
    %273 = arith.addf %265, %272 : vector<8x128xf32>
    %c12_224 = arith.constant 12 : index
    %c0_225 = arith.constant 0 : index
    %c0_226 = arith.constant 0 : index
    %274 = vector.load %arg3[%c12_224, %c0_225, %c0_226] : memref<17x8x8xf32, #tpu.memory_space<vmem>>, vector<1x8x8xf32>
    %275 = vector.shape_cast %274 : vector<1x8x8xf32> to vector<8x8xf32>
    %cst_227 = arith.constant dense<0.000000e+00> : vector<8x128xf32>
    %276 = tpu.matmul %275, %18, %cst_227 {dimension_numbers = #tpu.dot_dimension_numbers<[1], [0], [0], [1], [0, 0, 1, 1], [], []>} : vector<8x8xf32>, vector<8x128xf32>, vector<8x128xf32> -> vector<8x128xf32>
    %c12_228 = arith.constant 12 : index
    %c0_229 = arith.constant 0 : index
    %c0_230 = arith.constant 0 : index
    %277 = vector.load %arg7[%c12_228, %c0_229, %c0_230] : memref<17x1x128xf32, #tpu.memory_space<vmem>>, vector<1x1x128xf32>
    %278 = vector.shape_cast %277 : vector<1x1x128xf32> to vector<1x128xf32>
    %279 = vector.broadcast %278 : vector<1x128xf32> to vector<8x128xf32>
    %280 = arith.mulf %276, %279 : vector<8x128xf32>
    %281 = arith.addf %273, %280 : vector<8x128xf32>
    %c13_231 = arith.constant 13 : index
    %c0_232 = arith.constant 0 : index
    %c0_233 = arith.constant 0 : index
    %282 = vector.load %arg3[%c13_231, %c0_232, %c0_233] : memref<17x8x8xf32, #tpu.memory_space<vmem>>, vector<1x8x8xf32>
    %283 = vector.shape_cast %282 : vector<1x8x8xf32> to vector<8x8xf32>
    %cst_234 = arith.constant dense<0.000000e+00> : vector<8x128xf32>
    %284 = tpu.matmul %283, %18, %cst_234 {dimension_numbers = #tpu.dot_dimension_numbers<[1], [0], [0], [1], [0, 0, 1, 1], [], []>} : vector<8x8xf32>, vector<8x128xf32>, vector<8x128xf32> -> vector<8x128xf32>
    %c13_235 = arith.constant 13 : index
    %c0_236 = arith.constant 0 : index
    %c0_237 = arith.constant 0 : index
    %285 = vector.load %arg7[%c13_235, %c0_236, %c0_237] : memref<17x1x128xf32, #tpu.memory_space<vmem>>, vector<1x1x128xf32>
    %286 = vector.shape_cast %285 : vector<1x1x128xf32> to vector<1x128xf32>
    %287 = vector.broadcast %286 : vector<1x128xf32> to vector<8x128xf32>
    %288 = arith.mulf %284, %287 : vector<8x128xf32>
    %289 = arith.addf %281, %288 : vector<8x128xf32>
    %c14_238 = arith.constant 14 : index
    %c0_239 = arith.constant 0 : index
    %c0_240 = arith.constant 0 : index
    %290 = vector.load %arg3[%c14_238, %c0_239, %c0_240] : memref<17x8x8xf32, #tpu.memory_space<vmem>>, vector<1x8x8xf32>
    %291 = vector.shape_cast %290 : vector<1x8x8xf32> to vector<8x8xf32>
    %cst_241 = arith.constant dense<0.000000e+00> : vector<8x128xf32>
    %292 = tpu.matmul %291, %18, %cst_241 {dimension_numbers = #tpu.dot_dimension_numbers<[1], [0], [0], [1], [0, 0, 1, 1], [], []>} : vector<8x8xf32>, vector<8x128xf32>, vector<8x128xf32> -> vector<8x128xf32>
    %c14_242 = arith.constant 14 : index
    %c0_243 = arith.constant 0 : index
    %c0_244 = arith.constant 0 : index
    %293 = vector.load %arg7[%c14_242, %c0_243, %c0_244] : memref<17x1x128xf32, #tpu.memory_space<vmem>>, vector<1x1x128xf32>
    %294 = vector.shape_cast %293 : vector<1x1x128xf32> to vector<1x128xf32>
    %295 = vector.broadcast %294 : vector<1x128xf32> to vector<8x128xf32>
    %296 = arith.mulf %292, %295 : vector<8x128xf32>
    %297 = arith.addf %289, %296 : vector<8x128xf32>
    %c15_245 = arith.constant 15 : index
    %c0_246 = arith.constant 0 : index
    %c0_247 = arith.constant 0 : index
    %298 = vector.load %arg3[%c15_245, %c0_246, %c0_247] : memref<17x8x8xf32, #tpu.memory_space<vmem>>, vector<1x8x8xf32>
    %299 = vector.shape_cast %298 : vector<1x8x8xf32> to vector<8x8xf32>
    %cst_248 = arith.constant dense<0.000000e+00> : vector<8x128xf32>
    %300 = tpu.matmul %299, %18, %cst_248 {dimension_numbers = #tpu.dot_dimension_numbers<[1], [0], [0], [1], [0, 0, 1, 1], [], []>} : vector<8x8xf32>, vector<8x128xf32>, vector<8x128xf32> -> vector<8x128xf32>
    %c15_249 = arith.constant 15 : index
    %c0_250 = arith.constant 0 : index
    %c0_251 = arith.constant 0 : index
    %301 = vector.load %arg7[%c15_249, %c0_250, %c0_251] : memref<17x1x128xf32, #tpu.memory_space<vmem>>, vector<1x1x128xf32>
    %302 = vector.shape_cast %301 : vector<1x1x128xf32> to vector<1x128xf32>
    %303 = vector.broadcast %302 : vector<1x128xf32> to vector<8x128xf32>
    %304 = arith.mulf %300, %303 : vector<8x128xf32>
    %305 = arith.addf %297, %304 : vector<8x128xf32>
    %c16_252 = arith.constant 16 : index
    %c0_253 = arith.constant 0 : index
    %c0_254 = arith.constant 0 : index
    %306 = vector.load %arg3[%c16_252, %c0_253, %c0_254] : memref<17x8x8xf32, #tpu.memory_space<vmem>>, vector<1x8x8xf32>
    %307 = vector.shape_cast %306 : vector<1x8x8xf32> to vector<8x8xf32>
    %cst_255 = arith.constant dense<0.000000e+00> : vector<8x128xf32>
    %308 = tpu.matmul %307, %18, %cst_255 {dimension_numbers = #tpu.dot_dimension_numbers<[1], [0], [0], [1], [0, 0, 1, 1], [], []>} : vector<8x8xf32>, vector<8x128xf32>, vector<8x128xf32> -> vector<8x128xf32>
    %c16_256 = arith.constant 16 : index
    %c0_257 = arith.constant 0 : index
    %c0_258 = arith.constant 0 : index
    %309 = vector.load %arg7[%c16_256, %c0_257, %c0_258] : memref<17x1x128xf32, #tpu.memory_space<vmem>>, vector<1x1x128xf32>
    %310 = vector.shape_cast %309 : vector<1x1x128xf32> to vector<1x128xf32>
    %311 = vector.broadcast %310 : vector<1x128xf32> to vector<8x128xf32>
    %312 = arith.mulf %308, %311 : vector<8x128xf32>
    %313 = arith.addf %305, %312 : vector<8x128xf32>
    %cst_259 = arith.constant dense<0.000000e+00> : vector<8x128xf32>
    %314 = tpu.matmul %313, %162, %cst_259 {dimension_numbers = #tpu.dot_dimension_numbers<[1], [0], [0], [1], [0, 0, 1, 1], [], []>} : vector<8x128xf32>, vector<128x128xf32>, vector<8x128xf32> -> vector<8x128xf32>
    %315 = arith.addf %178, %314 : vector<8x128xf32>
    %c0_260 = arith.constant 0 : index
    %c0_261 = arith.constant 0 : index
    %316 = vector.load %arg14[%c0_260, %c0_261] : memref<8x128xf32, #tpu.memory_space<vmem>>, vector<8x128xf32>
    tpu.vector_store %arg14[%c0_260, %c0_261], %175 {strides = array<i32>} : memref<8x128xf32, #tpu.memory_space<vmem>>, vector<8x128xf32>,
    %c0_262 = arith.constant 0 : index
    %c0_263 = arith.constant 0 : index
    %317 = vector.load %arg15[%c0_262, %c0_263] : memref<8x128xf32, #tpu.memory_space<vmem>>, vector<8x128xf32>
    tpu.vector_store %arg15[%c0_262, %c0_263], %315 {strides = array<i32>} : memref<8x128xf32, #tpu.memory_space<vmem>>, vector<8x128xf32>,
    return
  }
}

</mosaic_0001>

<bundles_post_ra>
// kernel: tpu_custom_call.1
= control target key start
LH: loop header
LB: loop body
LE: loop exit
PB: predicated region body
PF: predicated region fallthrough
CT: control target
= control target key end

     0   :  { %21 = vsyncpa [#allocation3], 0  ;;  %s2365_s0 = inlined_call_operand.vmem [shape: f32[8,128], index: 0, kind: input, shape index: {}]   ;;  %s2366_s1 = inlined_call_operand.vmem [shape: f32[8,128], index: 1, kind: input, shape index: {}]   ;;  %s2367_s2 = inlined_call_operand.vmem [shape: f32[1,8,8], index: 2, kind: input, shape index: {}]   ;;  %s2368_s3 = inlined_call_operand.vmem [shape: f32[17,8,8], index: 3, kind: input, shape index: {}]   ;;  %s2369_s4 = inlined_call_operand.vmem [shape: f32[1,1,128], index: 4, kind: input, shape index: {}]   ;;  %s2370_s5 = inlined_call_operand.vmem [shape: f32[17,1,128], index: 5, kind: input, shape index: {}]   ;;  %s2371_s6 = inlined_call_operand.vmem [shape: f32[1,1,128], index: 6, kind: input, shape index: {}]   ;;  %s2372_s7 = inlined_call_operand.vmem [shape: f32[17,1,128], index: 7, kind: input, shape index: {}]   ;;  %s2373_s8 = inlined_call_operand.vmem [shape: f32[128,128], index: 8, kind: input, shape index: {}]   ;;  %s2374_s9 = inlined_call_operand.hbm [shape: f32[128,128], index: 9, kind: input, shape index: {}]   ;;  %s2375_s10 = inlined_call_operand.vmem [shape: f32[1,128], index: 10, kind: input, shape index: {}]   ;;  %s2376_s11 = inlined_call_operand.hbm [shape: f32[128,128], index: 11, kind: input, shape index: {}]   ;;  %s2377_s12 = inlined_call_operand.hbm [shape: f32[128,128], index: 12, kind: input, shape index: {}]   ;;  %s2378_s13 = inlined_call_operand.vmem [shape: f32[1,128], index: 13, kind: input, shape index: {}]   ;;  %s2379_s14 = inlined_call_operand.hbm [shape: f32[8,128], index: 14, kind: output, shape index: {0}]   ;;  %s2380_s15 = inlined_call_operand.hbm [shape: f32[8,128], index: 15, kind: output, shape index: {1}]  }
   0x1   :  { %22 = vsyncpa [#allocation6], 0 }
   0x2   :  { %23 = vsyncpa [#allocation4], 0 }
   0x3   :  { %24 = vsyncpa [#allocation10], 0  ;;  %s62_s20 = sshll.u32 %s2376_s11, 4  ;;  %s1684_s21 = smov [#allocation5]   ;;  %s63_s20 = int_to_ptr.hbm [resolvable:$true] %s62_s20 }
   0x4   :  { %s64_s22 = sshll.u32 %s1684_s21, 4  ;;  %s47_s25 = sshll.u32 %s2374_s9, 4  ;;  %s65_s22 = int_to_ptr.vmem [resolvable:$true] %s64_s22  ;;  %s48_s25 = int_to_ptr.hbm [resolvable:$true] %s47_s25 }
   0x5   :  { %s1685_s26 = smov 128   ;;  %s1686_s27 = smov 8  }
   0x6   :  { %70 = dma.hbm_to_vmem [thread:$0]  %s63_s20, 2048, %s65_s22, [#allocation6], %s1685_s26, %s1685_s26, %s1686_s27  }
   0x7   :  { %s1687_s28 = smov [#allocation2]   ;;  %s75_s17 = sshll.u32 %s2377_s12, 4  ;;  %s76_s17 = int_to_ptr.hbm [resolvable:$true] %s75_s17 }
   0x8   :  { %s49_s29 = sshll.u32 %s1687_s28, 4  ;;  %s1688_s11 = smov [#allocation7]   ;;  %s50_s29 = int_to_ptr.vmem [resolvable:$true] %s49_s29 }
   0x9   :  { %55 = dma.hbm_to_vmem [thread:$0]  %s48_s25, 2048, %s50_s29, [#allocation3], %s1685_s26, %s1685_s26, %s1686_s27  }
   0xa   :  { %s77_s18 = sshll.u32 %s1688_s11, 4  ;;  %s78_s18 = int_to_ptr.vmem [resolvable:$true] %s77_s18 }
   0xb   :  { %83 = dma.hbm_to_vmem [thread:$0]  %s76_s17, 2048, %s78_s18, [#allocation6], %s1685_s26, %s1685_s26, %s1686_s27  }
   0xc   :  { %1676 = dma.done.wait [#allocation3], 2048  }
   0xd   :  { %1677 = vsyncadd [#allocation3], 4294965248 }
   0xe   :  { %1678 = dma.done.wait [#allocation6], 4096  }
   0xf   :  { %1679 = vsyncadd [#allocation6], 4294963200  ;;  %v115_v0 = vld [vmem:[%s2373_s8 + $0x78] sm:$0xff]  ;;  %v114_v1 = vld [vmem:[%s2373_s8 + $0x70] sm:$0xff]  ;;  %vm157_vm0 = vcmask 64512   ;;  %s1400_s22 = sshll.u32 %s2379_s14, 4  ;;  %s1401_s22 = int_to_ptr.hbm [resolvable:$true] %s1400_s22 }
  0x10   :  { %136 = vmatpush.msra.mxu0 %v115_v0  ;;  %208 = vmatpush.msra.mxu3 %v115_v0  ;;  %v113_v2 = vld [vmem:[%s2373_s8 + $0x68] sm:$0xff]  ;;  %v112_v3 = vld [vmem:[%s2373_s8 + $0x60] sm:$0xff]  ;;  %v111_v5 = vld [vmem:[%s2373_s8 + $0x58] sm:$0xff]  ;;  %s1689_s23 = smov [#allocation8]   ;;  %s1411_s27 = sshll.u32 %s2380_s15, 4  ;;  %s1412_s27 = int_to_ptr.hbm [resolvable:$true] %s1411_s27 }
  0x11   :  { %v1795_v4 = vld [vmem:[%s2365_s0] sm:$0xff]  ;;  %v110_v6 = vld [vmem:[%s2373_s8 + $0x50] sm:$0xff]  ;;  %v1804_v7 = vld [vmem:[#allocation2 + $0x78] sm:$0xff]  ;;  %s1398_s24 = sshll.u32 %s1689_s23, 4  ;;  %s1399_s24 = int_to_ptr.vmem [resolvable:$true] %s1398_s24 }
  0x12   :  { %137 = vmatpush.msra.mxu0 %v114_v1  ;;  %209 = vmatpush.msra.mxu3 %v114_v1  ;;  %v1806_v8 = vld [vmem:[#allocation2 + $0x70] sm:$0xff]  ;;  %v109_v9 = vld [vmem:[%s2373_s8 + $0x48] sm:$0xff]  ;;  %v108_v11 = vld [vmem:[%s2373_s8 + $0x40] sm:$0xff] }
  0x13   :  { %309 = vmatpush.msra.mxu1 %v1795_v4  ;;  %186 = vmatpush.msra.mxu2 %v1804_v7  ;;  %v1813_v10 = vld [vmem:[#allocation2 + $0x68] sm:$0xff]  ;;  %v1819_v12 = vld [vmem:[#allocation2 + $0x60] sm:$0xff]  ;;  %v107_v13 = vld [vmem:[%s2373_s8 + $0x38] sm:$0xff] }
  0x14   :  { %138 = vmatpush.msra.mxu0 %v113_v2  ;;  %210 = vmatpush.msra.mxu3 %v113_v2  ;;  %v1824_v14 = vld [vmem:[#allocation2 + $0x58] sm:$0xff]  ;;  %v106_v15 = vld [vmem:[%s2373_s8 + $0x30] sm:$0xff]  ;;  %v105_v17 = vld [vmem:[%s2373_s8 + $0x28] sm:$0xff] }
  0x15   :  { %341 = vmatpush.msrb.mxu1 %v1795_v4  ;;  %187 = vmatpush.msra.mxu2 %v1806_v8  ;;  %v1830_v16 = vld [vmem:[#allocation2 + $0x50] sm:$0xff]  ;;  %v1836_v18 = vld [vmem:[#allocation2 + $0x48] sm:$0xff]  ;;  %v104_v19 = vld [vmem:[%s2373_s8 + $0x20] sm:$0xff] }
  0x16   :  { %139 = vmatpush.msra.mxu0 %v112_v3  ;;  %211 = vmatpush.msra.mxu3 %v112_v3  ;;  %v1842_v20 = vld [vmem:[#allocation2 + $0x40] sm:$0xff]  ;;  %v103_v21 = vld [vmem:[%s2373_s8 + $0x18] sm:$0xff]  ;;  %v102_v23 = vld [vmem:[%s2373_s8 + $0x10] sm:$0xff] }
  0x17   :  { %188 = vmatpush.msra.mxu2 %v1813_v10  ;;  %v1849_v22 = vld [vmem:[#allocation2 + $0x38] sm:$0xff]  ;;  %v1855_v24 = vld [vmem:[#allocation2 + $0x30] sm:$0xff]  ;;  %v101_v25 = vld [vmem:[%s2373_s8 + $0x8] sm:$0xff] }
  0x18   :  { %140 = vmatpush.msra.mxu0 %v111_v5  ;;  %212 = vmatpush.msra.mxu3 %v111_v5  ;;  %v100_v26 = vld [vmem:[%s2373_s8] sm:$0xff]  ;;  %v1880_v29 = vld [vmem:[#allocation2 + $0x28] sm:$0xff]  ;;  %v1885_v31 = vld [vmem:[#allocation2 + $0x18] sm:$0xff] }
  0x19   :  { %189 = vmatpush.msra.mxu2 %v1819_v12  ;;  %v99_v27 = vld [vmem:[%s2366_s1] sm:$0xff]  ;;  %v1888_v32 = vld [vmem:[#allocation2 + $0x10] sm:$0xff]  ;;  %v1892_v33 = vld [vmem:[#allocation2 + $0x8] sm:$0xff] }
  0x1a   :  { %141 = vmatpush.msra.mxu0 %v110_v6  ;;  %213 = vmatpush.msra.mxu3 %v110_v6  ;;  %v1875_v28 = vld [vmem:[%s2367_s2] sm:$0xff]  ;;  %v1902_v35 = vld [vmem:[%s2368_s3 + $0x8] sm:$0xff]  ;;  %v1909_v36 = vld [vmem:[%s2368_s3 + $0x10] sm:$0xff] }
  0x1b   :  { %190 = vmatpush.msra.mxu2 %v1824_v14  ;;  %v1883_v30 = vld [vmem:[#allocation2 + $0x20] sm:$0xff]  ;;  %2388 = vst [vmem:[#allocation15_spill] sm:$0xff] %v1909_v36  ;;  %1433 = vmatmul.msk.f32.vlgmr.msra.gmra.mxu1 %vm157_vm0, %v1909_v36  ;;  %v1918_v37 = vld [vmem:[%s2368_s3 + $0x18] sm:$0xff]  ;;  %v1923_v38 = vld [vmem:[%s2368_s3 + $0x30] sm:$0xff] }
  0x1c   :  { %142 = vmatpush.msra.mxu0 %v109_v9  ;;  %214 = vmatpush.msra.mxu3 %v109_v9  ;;  %v1895_v34 = vld [vmem:[#allocation2] sm:$0xff]  ;;  %2389 = vst [vmem:[#allocation16_spill] sm:$0xff] %v1923_v38  ;;  %v1944_v41 = vld [vmem:[%s2368_s3 + $0x38] sm:$0xff]  ;;  %v1949_v42 = vld [vmem:[%s2368_s3 + $0x50] sm:$0xff] }
  0x1d   :  { %191 = vmatpush.msra.mxu2 %v1830_v16  ;;  %469 = vmatpush.msra.mxu1 %v1795_v4  ;;  %v1928_v39 = vld [vmem:[%s2368_s3 + $0x20] sm:$0xff]  ;;  %2390 = vst [vmem:[#allocation17_spill] sm:$0xff] %v1949_v42  ;;  %v1970_v47 = vld [vmem:[%s2368_s3 + $0x58] sm:$0xff]  ;;  %v1975_v48 = vld [vmem:[%s2368_s3 + $0x70] sm:$0xff] }
  0x1e   :  { %143 = vmatpush.msra.mxu0 %v108_v11  ;;  %215 = vmatpush.msra.mxu3 %v108_v11  ;;  %v1954_v43 = vld [vmem:[%s2368_s3 + $0x40] sm:$0xff]  ;;  %2391 = vst [vmem:[#allocation18_spill] sm:$0xff] %v1975_v48  ;;  %v1985_v50 = vld [vmem:[#allocation5 + $0x78] sm:$0xff]  ;;  %v1993_v52 = vld [vmem:[#allocation5 + $0x70] sm:$0xff] }
  0x1f   :  { %192 = vmatpush.msra.mxu2 %v1836_v18  ;;  %v1519_v44 = vld [vmem:[%s2369_s4] ss:$0 sm:$0xff]  ;;  %v1991_v51 = vld [vmem:[#allocation7 + $0x78] sm:$0xff]  ;;  %v1995_v53 = vld [vmem:[#allocation7 + $0x70] sm:$0xff] }
  0x20   :  { %144 = vmatpush.msra.mxu0 %v107_v13  ;;  %216 = vmatpush.msra.mxu3 %v107_v13  ;;  %v1980_v49 = vld [vmem:[%s2368_s3 + $0x60] sm:$0xff]  ;;  %v1999_v54 = vld [vmem:[#allocation5 + $0x68] sm:$0xff]  ;;  %v2013_v57 = vld [vmem:[%s2368_s3 + $0x78] sm:$0xff] }
  0x21   :  { %193 = vmatpush.msra.mxu2 %v1842_v20  ;;  %v2001_v55 = vld [vmem:[#allocation7 + $0x68] sm:$0xff]  ;;  %v2006_v56 = vld [vmem:[%s2368_s3] sm:$0xff]  ;;  %v2031_v61 = vld [vmem:[#allocation5 + $0x58] sm:$0xff] }
  0x22   :  { %145 = vmatpush.msra.mxu0 %v106_v15  ;;  %217 = vmatpush.msra.mxu3 %v106_v15  ;;  %v2018_v58 = vld [vmem:[%s2368_s3 + $0x80] sm:$0xff]  ;;  %v2036_v62 = vld [vmem:[#allocation7 + $0x58] sm:$0xff]  ;;  %v2039_v63 = vld [vmem:[#allocation5 + $0x50] sm:$0xff] }
  0x23   :  { %194 = vmatpush.msra.mxu2 %v1849_v22  ;;  %1436 = vmatmul.msk.f32.vlgmr.msrb.gmra.mxu1 %vm157_vm0, %v1918_v37  ;;  %v2022_v59 = vld [vmem:[#allocation5 + $0x60] sm:$0xff]  ;;  %v2042_v0 = vld [vmem:[#allocation7 + $0x50] sm:$0xff]  ;;  %v2047_v1 = vld [vmem:[%s2368_s3 + $0x28] sm:$0xff] }
  0x24   :  { %146 = vmatpush.msra.mxu0 %v105_v17  ;;  %218 = vmatpush.msra.mxu3 %v105_v17  ;;  %v2026_v60 = vld [vmem:[#allocation7 + $0x60] sm:$0xff]  ;;  %v2050_v2 = vld [vmem:[#allocation5 + $0x48] sm:$0xff]  ;;  %v2065_v9 = vld [vmem:[#allocation5 + $0x38] sm:$0xff] }
  0x25   :  { %195 = vmatpush.msra.mxu2 %v1855_v24  ;;  %597 = vmatpush.msrb.mxu1 %v1795_v4  ;;  %v2053_v3 = vld [vmem:[#allocation7 + $0x48] sm:$0xff]  ;;  %v2056_v5 = vld [vmem:[#allocation5 + $0x40] sm:$0xff]  ;;  %v2068_v11 = vld [vmem:[#allocation7 + $0x38] sm:$0xff] }
  0x26   :  { %147 = vmatpush.msra.mxu0 %v104_v19  ;;  %219 = vmatpush.msra.mxu3 %v104_v19  ;;  %v2061_v6 = vld [vmem:[#allocation7 + $0x40] sm:$0xff]  ;;  %v2071_v13 = vld [vmem:[#allocation5 + $0x30] sm:$0xff]  ;;  %v2082_v17 = vld [vmem:[#allocation5 + $0x28] sm:$0xff] }
  0x27   :  { %196 = vmatpush.msra.mxu2 %v1880_v29  ;;  %v2074_v15 = vld [vmem:[#allocation7 + $0x30] sm:$0xff]  ;;  %v2085_v19 = vld [vmem:[#allocation7 + $0x28] sm:$0xff] }
  0x28   :  { %148 = vmatpush.msra.mxu0 %v103_v21  ;;  %220 = vmatpush.msra.mxu3 %v103_v21  ;;  %v2088_v21 = vld [vmem:[#allocation5 + $0x20] sm:$0xff] }
  0x29   :  { %197 = vmatpush.msra.mxu2 %v1883_v30 }
  0x2a   :  { %149 = vmatpush.msra.mxu0 %v102_v23  ;;  %221 = vmatpush.msra.mxu3 %v102_v23  ;;  %v2093_v23 = vld [vmem:[#allocation7 + $0x20] sm:$0xff] }
  0x2b   :  { %198 = vmatpush.msra.mxu2 %v1885_v31  ;;  %1448 = vmatmul.msk.f32.vlgmr.msra.gmra.mxu1 %vm157_vm0, %v1944_v41 }
  0x2c   :  { %150 = vmatpush.msra.mxu0 %v101_v25  ;;  %222 = vmatpush.msra.mxu3 %v101_v25  ;;  %v2097_v25 = vld [vmem:[#allocation5 + $0x18] sm:$0xff] }
  0x2d   :  { %199 = vmatpush.msra.mxu2 %v1888_v32  ;;  %725 = vmatpush.msra.mxu1 %v1795_v4 }
  0x2e   :  { %151 = vmatpush.msra.mxu0 %v100_v26  ;;  %223 = vmatpush.msra.mxu3 %v100_v26  ;;  %v2100_v26 = vld [vmem:[#allocation7 + $0x18] sm:$0xff] }
  0x2f   :  { %152 = vmatmul.f32.vlgmr.msra.gmra.mxu0 %v1795_v4  ;;  %224 = vmatmul.f32.vlgmr.msra.gmra.mxu3 %v99_v27 }
  0x30   :  { %176 = vmatpush.msrb.mxu0 %v99_v27  ;;  %277 = vmatpush.msrb.mxu3 %v1795_v4  ;;  %v2108_v27 = vld [vmem:[%s2368_s3 + $0x68] sm:$0xff] }
  0x31   :  { %200 = vmatpush.msra.mxu2 %v1892_v33 }
  0x32   :  { %373 = vmatpush.msra.mxu0 %v1795_v4  ;;  %437 = vmatpush.msra.mxu3 %v1795_v4 }
  0x33   :  { %201 = vmatpush.msra.mxu2 %v1895_v34  ;;  %1460 = vmatmul.msk.f32.vlgmr.msrb.gmra.mxu1 %vm157_vm0, %v1970_v47 }
  0x35   :  { %247 = vmatpush.msrb.mxu2 %v1795_v4 }
  0x37   :  { %1427 = vmatmul.msk.f32.vlgmr.msrb.gmra.mxu0 %vm157_vm0, %v1875_v28  ;;  %1430 = vmatmul.msk.f32.vlgmr.msrb.gmra.mxu3 %vm157_vm0, %v1902_v35 }
  0x38   :  { %501 = vmatpush.msrb.mxu0 %v1795_v4  ;;  %565 = vmatpush.msrb.mxu3 %v1795_v4 }
  0x3b   :  { %1472 = vmatmul.msk.f32.vlgmr.msra.gmra.mxu1 %vm157_vm0, %v2013_v57 }
  0x3f   :  { %1445 = vmatmul.msk.f32.vlgmr.msra.gmra.mxu3 %vm157_vm0, %v1923_v38  ;;  %1439 = vmatmul.msk.f32.vlgmr.msra.gmra.mxu0 %vm157_vm0, %v1928_v39 }
  0x40   :  { %693 = vmatpush.msra.mxu3 %v1795_v4  ;;  %629 = vmatpush.msra.mxu0 %v1795_v4 }
  0x47   :  { %1457 = vmatmul.msk.f32.vlgmr.msrb.gmra.mxu3 %vm157_vm0, %v1949_v42  ;;  %1451 = vmatmul.msk.f32.vlgmr.msrb.gmra.mxu0 %vm157_vm0, %v1954_v43 }
  0x48   :  { %757 = vmatpush.msrb.mxu0 %v1795_v4  ;;  %827 = vmatpush.msrb.mxu3 %v1985_v50 }
  0x4a   :  { %828 = vmatpush.msrb.mxu3 %v1993_v52 }
  0x4c   :  { %829 = vmatpush.msrb.mxu3 %v1999_v54 }
  0x4e   :  { %830 = vmatpush.msrb.mxu3 %v2022_v59 }
  0x4f   :  { %1469 = vmatmul.msk.f32.vlgmr.msra.gmra.mxu3 %vm157_vm0, %v1975_v48  ;;  %1463 = vmatmul.msk.f32.vlgmr.msra.gmra.mxu0 %vm157_vm0, %v1980_v49  ;;  %v1524_v48 = vld [vmem:[%s2370_s5 + $0x4] ss:$0 sm:$0xff] }
  0x50   :  { %872 = vmatpush.msra.mxu0 %v1991_v51  ;;  %831 = vmatpush.msrb.mxu3 %v2031_v61 }
  0x52   :  { %873 = vmatpush.msra.mxu0 %v1995_v53  ;;  %832 = vmatpush.msrb.mxu3 %v2039_v63 }
  0x54   :  { %874 = vmatpush.msra.mxu0 %v2001_v55  ;;  %833 = vmatpush.msrb.mxu3 %v2050_v2 }
  0x56   :  { %875 = vmatpush.msra.mxu0 %v2026_v60  ;;  %834 = vmatpush.msrb.mxu3 %v2056_v5 }
  0x57   :  { %1475 = vmatmul.msk.f32.vlgmr.msrb.gmra.mxu0 %vm157_vm0, %v2018_v58 }
  0x58   :  { %876 = vmatpush.msra.mxu0 %v2036_v62  ;;  %835 = vmatpush.msrb.mxu3 %v2065_v9 }
  0x5a   :  { %877 = vmatpush.msra.mxu0 %v2042_v0  ;;  %836 = vmatpush.msrb.mxu3 %v2071_v13 }
  0x5c   :  { %878 = vmatpush.msra.mxu0 %v2053_v3  ;;  %837 = vmatpush.msrb.mxu3 %v2082_v17 }
  0x5e   :  { %879 = vmatpush.msra.mxu0 %v2061_v6  ;;  %838 = vmatpush.msrb.mxu3 %v2088_v21 }
  0x60   :  { %880 = vmatpush.msra.mxu0 %v2068_v11  ;;  %839 = vmatpush.msrb.mxu3 %v2097_v25 }
  0x62   :  { %881 = vmatpush.msra.mxu0 %v2074_v15 }
  0x64   :  { %882 = vmatpush.msra.mxu0 %v2085_v19 }
  0x66   :  { %883 = vmatpush.msra.mxu0 %v2093_v23 }
  0x68   :  { %884 = vmatpush.msra.mxu0 %v2100_v26 }
  0xac   :  { %v1939_v40 = vpop.f32.mrf.mxu0 }
  0xb4   :  { %v178_v45 = vpop.f32.mrf.mxu0 }
  0xb5   :  { %v185_v46 = vmul.f32 %v1519_v44, %v178_v45  ;;  %v1521_v45 = vld [vmem:[%s2370_s5] ss:$0 sm:$0xff] }
  0xb7   :  { %202 = vmatmul.f32.vlgmr.msra.gmra.mxu2 %v185_v46 }
  0xb8   :  { %405 = vmatpush.msra.mxu2 %v1795_v4 }
  0xbc   :  { %v375_v44 = vpop.f32.mrf.mxu0 }
  0xbf   :  { %1428 = vmatmul.msk.f32.vlgmr.msrb.gmra.mxu2 %vm157_vm0, %v2006_v56 }
  0xc0   :  { %533 = vmatpush.msrb.mxu2 %v1795_v4 }
  0xc7   :  { %1442 = vmatmul.msk.f32.vlgmr.msra.gmra.mxu2 %vm157_vm0, %v2047_v1 }
  0xc8   :  { %661 = vmatpush.msra.mxu2 %v1795_v4  ;;  %v2079_v4 = vld [vmem:[%s2368_s3 + $0x48] sm:$0xff] }
  0xcf   :  { %1454 = vmatmul.msk.f32.vlgmr.msrb.gmra.mxu2 %vm157_vm0, %v2079_v4 }
  0xd0   :  { %769 = vmatpush.msrb.mxu2 %v1804_v7  ;;  %v2127_v7 = vld [vmem:[#allocation5 + $0x10] sm:$0xff] }
  0xd1   :  { %840 = vmatpush.msrb.mxu3 %v2127_v7 }
  0xd2   :  { %770 = vmatpush.msrb.mxu2 %v1806_v8  ;;  %v2129_v8 = vld [vmem:[#allocation7 + $0x10] sm:$0xff] }
  0xd3   :  { %2392 = vst [vmem:[#allocation19_spill] sm:$0xff] %v2129_v8  ;;  %885 = vmatpush.msra.mxu0 %v2129_v8 }
  0xd4   :  { %771 = vmatpush.msrb.mxu2 %v1813_v10  ;;  %v2133_v10 = vld [vmem:[#allocation5 + $0x8] sm:$0xff] }
  0xd5   :  { %841 = vmatpush.msrb.mxu3 %v2133_v10 }
  0xd6   :  { %772 = vmatpush.msrb.mxu2 %v1819_v12  ;;  %v2135_v12 = vld [vmem:[#allocation7 + $0x8] sm:$0xff] }
  0xd7   :  { %1466 = vmatmul.msk.f32.vlgmr.msra.gmra.mxu2 %vm157_vm0, %v2108_v27  ;;  %2393 = vst [vmem:[#allocation20_spill] sm:$0xff] %v2135_v12  ;;  %886 = vmatpush.msra.mxu0 %v2135_v12 }
  0xd8   :  { %773 = vmatpush.msrb.mxu2 %v1824_v14  ;;  %v2139_v14 = vld [vmem:[#allocation5] sm:$0xff] }
  0xd9   :  { %842 = vmatpush.msrb.mxu3 %v2139_v14 }
  0xda   :  { %774 = vmatpush.msrb.mxu2 %v1830_v16  ;;  %v2141_v16 = vld [vmem:[#allocation7] sm:$0xff] }
  0xdb   :  { %2394 = vst [vmem:[#allocation21_spill] sm:$0xff] %v2141_v16  ;;  %887 = vmatpush.msra.mxu0 %v2141_v16 }
  0xdc   :  { %775 = vmatpush.msrb.mxu2 %v1836_v18  ;;  %v2145_v18 = vpop.f32.mrf.mxu3 }
  0xde   :  { %776 = vmatpush.msrb.mxu2 %v1842_v20  ;;  %v311_v20 = vpop.f32.mrf.mxu1 }
  0xe0   :  { %777 = vmatpush.msrb.mxu2 %v1849_v22  ;;  %v2150_v22 = vld [vmem:[%s2375_s10] ss:$0 sm:$0xff] }
  0xe2   :  { %778 = vmatpush.msrb.mxu2 %v1855_v24  ;;  %v154_v24 = vadd.f32 %v2150_v22, %v1939_v40  ;;  %v1520_v40 = vld [vmem:[%s2370_s5 + $0x2] ss:$0 sm:$0xff] }
  0xe3   :  { %v319_v38 = vmul.f32 %v1520_v40, %v311_v20 }
  0xe4   :  { %779 = vmatpush.msrb.mxu2 %v1880_v29 }
  0xe6   :  { %780 = vmatpush.msrb.mxu2 %v1883_v30 }
  0xe8   :  { %781 = vmatpush.msrb.mxu2 %v1885_v31  ;;  %v279_v31 = vpop.f32.mrf.mxu3 }
  0xea   :  { %782 = vmatpush.msrb.mxu2 %v1888_v32  ;;  %v343_v32 = vpop.f32.mrf.mxu1 }
  0xec   :  { %783 = vmatpush.msrb.mxu2 %v1892_v33 }
  0xee   :  { %784 = vmatpush.msrb.mxu2 %v1895_v34  ;;  %v1522_v34 = vld [vmem:[%s2370_s5 + $0x1] ss:$0 sm:$0xff] }
  0xef   :  { %v287_v46 = vmul.f32 %v1522_v34, %v279_v31  ;;  %v383_v31 = vmul.f32 %v1524_v48, %v375_v44  ;;  %v1525_v34 = vld [vmem:[%s2370_s5 + $0x5] ss:$0 sm:$0xff]  ;;  %v1528_v44 = vld [vmem:[%s2370_s5 + $0x8] ss:$0 sm:$0xff] }
  0xf0   :  { %v439_v42 = vpop.f32.mrf.mxu3 }
  0xf2   :  { %v471_v12 = vpop.f32.mrf.mxu1 }
 0x13a   :  { %v203_v29 = vpop.f32.mrf.mxu2 }
 0x13b   :  { %v206_v30 = vadd.f32 %v203_v29, %v154_v24  ;;  %v1523_v24 = vld [vmem:[%s2370_s5 + $0x3] ss:$0 sm:$0xff] }
 0x13c   :  { %v351_v16 = vmul.f32 %v1523_v24, %v343_v32  ;;  %v567_v24 = vpop.f32.mrf.mxu3 }
 0x13d   :  { %v2154_v33 = vmax.f32 %v206_v30, 0.0 }
 0x13f   :  { %843 = vmatmul.f32.vlgmr.msrb.gmra.mxu3 %v2154_v33  ;;  %928 = vmatpush.msra.mxu2 %v2154_v33 }
 0x140   :  { %953 = vmatpush.msra.mxu3 %v2154_v33  ;;  %980 = vmatpush.msrb.mxu0 %v2154_v33 }
 0x142   :  { %1034 = vmatpush.msrb.mxu3 %v2154_v33  ;;  %v249_v29 = vpop.f32.mrf.mxu2 }
 0x143   :  { %v256_v30 = vmul.f32 %v1521_v45, %v249_v29  ;;  %v1526_v45 = vld [vmem:[%s2370_s5 + $0x6] ss:$0 sm:$0xff]  ;;  %v503_v29 = vpop.f32.mrf.mxu0 }
 0x144   :  { %v447_v48 = vmul.f32 %v1526_v45, %v439_v42  ;;  %v1530_v42 = vld [vmem:[%s2370_s5 + $0xa] ss:$0 sm:$0xff] }
 0x145   :  { %v288_v36 = vadd.f32 %v287_v46, %v256_v30 }
 0x147   :  { %v320_v8 = vadd.f32 %v319_v38, %v288_v36  ;;  %1479 = vmatmul.msk.f32.vlgmr.msra.gmra.mxu3 %vm157_vm0, %v1902_v35  ;;  %v1527_v36 = vld [vmem:[%s2370_s5 + $0x7] ss:$0 sm:$0xff] }
 0x148   :  { %1142 = vmatpush.msra.mxu3 %v2154_v33  ;;  %v479_v46 = vmul.f32 %v1527_v36, %v471_v12  ;;  %v1531_v12 = vld [vmem:[%s2370_s5 + $0xb] ss:$0 sm:$0xff]  ;;  %v575_v36 = vmul.f32 %v1530_v42, %v567_v24  ;;  %v695_v24 = vpop.f32.mrf.mxu3 }
 0x149   :  { %v352_v20 = vadd.f32 %v351_v16, %v320_v8  ;;  %v511_v8 = vmul.f32 %v1528_v44, %v503_v29  ;;  %v1529_v16 = vld [vmem:[%s2370_s5 + $0x9] ss:$0 sm:$0xff] }
 0x14a   :  { %v407_v38 = vpop.f32.mrf.mxu2 }
 0x14b   :  { %v384_v32 = vadd.f32 %v383_v31, %v352_v20  ;;  %v415_v35 = vmul.f32 %v1525_v34, %v407_v38  ;;  %v599_v31 = vpop.f32.mrf.mxu1  ;;  %v631_v20 = vpop.f32.mrf.mxu0  ;;  %v1532_v38 = vld [vmem:[%s2370_s5 + $0xc] ss:$0 sm:$0xff] }
 0x14c   :  { %v639_v44 = vmul.f32 %v1532_v38, %v631_v20 }
 0x14d   :  { %v416_v40 = vadd.f32 %v415_v35, %v384_v32  ;;  %v607_v35 = vmul.f32 %v1531_v12, %v599_v31  ;;  %v1536_v12 = vld [vmem:[%s2370_s5 + $0x10] ss:$0 sm:$0xff] }
 0x14f   :  { %v448_v30 = vadd.f32 %v447_v48, %v416_v40  ;;  %1485 = vmatmul.msk.f32.vlgmr.msrb.gmra.mxu3 %vm157_vm0, %v1928_v39  ;;  %v1533_v40 = vld [vmem:[%s2370_s5 + $0xd] ss:$0 sm:$0xff] }
 0x150   :  { %1250 = vmatpush.msrb.mxu3 %v2154_v33 }
 0x151   :  { %v480_v34 = vadd.f32 %v479_v46, %v448_v30  ;;  %v1534_v46 = vld [vmem:[%s2370_s5 + $0xe] ss:$0 sm:$0xff] }
 0x152   :  { %v535_v45 = vpop.f32.mrf.mxu2 }
 0x153   :  { %v512_v39 = vadd.f32 %v511_v8, %v480_v34  ;;  %v543_v29 = vmul.f32 %v1529_v16, %v535_v45  ;;  %v1535_v8 = vld [vmem:[%s2370_s5 + $0xf] ss:$0 sm:$0xff]  ;;  %v727_v42 = vpop.f32.mrf.mxu1  ;;  %v703_v34 = vmul.f32 %v1534_v46, %v695_v24  ;;  %v759_v45 = vpop.f32.mrf.mxu0 }
 0x155   :  { %v544_v32 = vadd.f32 %v543_v29, %v512_v39  ;;  %v735_v39 = vmul.f32 %v1535_v8, %v727_v42  ;;  %v1548_v42 = vld [vmem:[%s2372_s7 + $0x9] ss:$0 sm:$0xff] }
 0x157   :  { %v576_v48 = vadd.f32 %v575_v36, %v544_v32  ;;  %1493 = vmatmul.msk.f32.vlgmr.msra.gmra.mxu3 %vm157_vm0, %v1954_v43  ;;  %v767_v36 = vmul.f32 %v1536_v12, %v759_v45 }
 0x158   :  { %1358 = vmatpush.msra.mxu3 %v2154_v33 }
 0x159   :  { %v608_v30 = vadd.f32 %v607_v35, %v576_v48  ;;  %v1546_v48 = vld [vmem:[%s2372_s7 + $0x7] ss:$0 sm:$0xff] }
 0x15a   :  { %v663_v16 = vpop.f32.mrf.mxu2 }
 0x15b   :  { %v640_v43 = vadd.f32 %v639_v44, %v608_v30  ;;  %v671_v31 = vmul.f32 %v1533_v40, %v663_v16  ;;  %v1547_v40 = vld [vmem:[%s2372_s7 + $0x8] ss:$0 sm:$0xff] }
 0x15d   :  { %v672_v20 = vadd.f32 %v671_v31, %v640_v43 }
 0x15f   :  { %v704_v29 = vadd.f32 %v703_v34, %v672_v20  ;;  %1501 = vmatmul.msk.f32.vlgmr.msrb.gmra.mxu3 %vm157_vm0, %v1980_v49  ;;  %v226_v49 = vadd.f32 %v2150_v22, %v2145_v18  ;;  %v1549_v20 = vld [vmem:[%s2372_s7 + $0xa] ss:$0 sm:$0xff] }
 0x161   :  { %v736_v38 = vadd.f32 %v735_v39, %v704_v29  ;;  %v1550_v39 = vld [vmem:[%s2372_s7 + $0xb] ss:$0 sm:$0xff] }
 0x163   :  { %v768_v32 = vadd.f32 %v767_v36, %v736_v38  ;;  %v1551_v38 = vld [vmem:[%s2372_s7 + $0xc] ss:$0 sm:$0xff] }
 0x165   :  { %785 = vmatmul.f32.vlgmr.msrb.gmra.mxu2 %v768_v32 }
 0x166   :  { %1007 = vmatpush.msrb.mxu2 %v2154_v33 }
 0x167   :  { %1509 = vmatmul.msk.f32.vlgmr.msra.gmra.mxu3 %vm157_vm0, %v2018_v58 }
 0x16d   :  { %1478 = vmatmul.msk.f32.vlgmr.msra.gmra.mxu2 %vm157_vm0, %v2006_v56 }
 0x16e   :  { %1115 = vmatpush.msra.mxu2 %v2154_v33 }
 0x175   :  { %1483 = vmatmul.msk.f32.vlgmr.msrb.gmra.mxu2 %vm157_vm0, %v1918_v37  ;;  %v2396_v37 = vld [vmem:[#allocation20_spill] sm:$0xff] }
 0x176   :  { %1223 = vmatpush.msrb.mxu2 %v2154_v33 }
 0x17d   :  { %1491 = vmatmul.msk.f32.vlgmr.msra.gmra.mxu2 %vm157_vm0, %v1944_v41  ;;  %v2397_v41 = vld [vmem:[#allocation21_spill] sm:$0xff] }
 0x17e   :  { %1331 = vmatpush.msra.mxu2 %v2154_v33 }
 0x185   :  { %1499 = vmatmul.msk.f32.vlgmr.msrb.gmra.mxu2 %vm157_vm0, %v1970_v47  ;;  %v1538_v47 = vld [vmem:[%s2371_s6] ss:$0 sm:$0xff] }
 0x18d   :  { %1507 = vmatmul.msk.f32.vlgmr.msra.gmra.mxu2 %vm157_vm0, %v2013_v57 }
 0x1c2   :  { %v844_v57 = vpop.f32.mrf.mxu3 }
 0x1e8   :  { %v786_v56 = vpop.f32.mrf.mxu2 }
 0x1e9   :  { %v789_v58 = vadd.f32 %v786_v56, %v226_v49 }
 0x1eb   :  { %v790_v35 = vmax.f32 %v789_v58, 0.0 }
 0x1ed   :  { %862 = vmatpush.msrb.mxu1 %v790_v35 }
 0x1ee   :  { %1477 = vmatmul.msk.f32.vlgmr.msrb.gmra.mxu1 %vm157_vm0, %v1875_v28  ;;  %v2395_v28 = vld [vmem:[#allocation19_spill] sm:$0xff] }
 0x1ef   :  { %893 = vmatpush.msra.mxu1 %v1985_v50 }
 0x1f1   :  { %894 = vmatpush.msra.mxu1 %v1993_v52  ;;  %v2398_v52 = vld [vmem:[#allocation15_spill] sm:$0xff] }
 0x1f3   :  { %895 = vmatpush.msra.mxu1 %v1999_v54  ;;  %v2400_v54 = vld [vmem:[#allocation17_spill] sm:$0xff] }
 0x1f5   :  { %896 = vmatpush.msra.mxu1 %v2022_v59  ;;  %v930_v59 = vpop.f32.mrf.mxu2 }
 0x1f7   :  { %897 = vmatpush.msra.mxu1 %v2031_v61  ;;  %v2301_v61 = vld [vmem:[%s2378_s13] ss:$0 sm:$0xff] }
 0x1f9   :  { %898 = vmatpush.msra.mxu1 %v2039_v63  ;;  %v845_v63 = vadd.f32 %v2301_v61, %v844_v57 }
 0x1fb   :  { %899 = vmatpush.msra.mxu1 %v2050_v2 }
 0x1fd   :  { %900 = vmatpush.msra.mxu1 %v2056_v5  ;;  %v1540_v5 = vld [vmem:[%s2372_s7 + $0x1] ss:$0 sm:$0xff] }
 0x1ff   :  { %901 = vmatpush.msra.mxu1 %v2065_v9 }
 0x201   :  { %902 = vmatpush.msra.mxu1 %v2071_v13  ;;  %v1541_v13 = vld [vmem:[%s2372_s7 + $0x2] ss:$0 sm:$0xff] }
 0x203   :  { %903 = vmatpush.msra.mxu1 %v2082_v17  ;;  %v1543_v17 = vld [vmem:[%s2372_s7 + $0x4] ss:$0 sm:$0xff] }
 0x205   :  { %904 = vmatpush.msra.mxu1 %v2088_v21 }
 0x207   :  { %905 = vmatpush.msra.mxu1 %v2097_v25 }
 0x209   :  { %906 = vmatpush.msra.mxu1 %v2127_v7 }
 0x20b   :  { %907 = vmatpush.msra.mxu1 %v2133_v10 }
 0x20d   :  { %908 = vmatpush.msra.mxu1 %v2139_v14 }
 0x20e   :  { %909 = vmatmul.f32.vlgmr.msra.gmra.mxu1 %v790_v35  ;;  %v1552_v35 = vld [vmem:[%s2372_s7 + $0xd] ss:$0 sm:$0xff] }
 0x20f   :  { %1061 = vmatpush.msrb.mxu1 %v2154_v33 }
 0x211   :  { %1169 = vmatpush.msra.mxu1 %v2154_v33 }
 0x216   :  { %1487 = vmatmul.msk.f32.vlgmr.msrb.gmra.mxu1 %vm157_vm0, %v2047_v1  ;;  %v1009_v1 = vpop.f32.mrf.mxu2 }
 0x217   :  { %1277 = vmatpush.msrb.mxu1 %v2154_v33 }
 0x21e   :  { %1495 = vmatmul.msk.f32.vlgmr.msra.gmra.mxu1 %vm157_vm0, %v2079_v4 }
 0x21f   :  { %1370 = vmatpush.msra.mxu1 %v1991_v51 }
 0x221   :  { %1371 = vmatpush.msra.mxu1 %v1995_v53  ;;  %v2399_v53 = vld [vmem:[#allocation16_spill] sm:$0xff] }
 0x223   :  { %1372 = vmatpush.msra.mxu1 %v2001_v55  ;;  %v2401_v55 = vld [vmem:[#allocation18_spill] sm:$0xff] }
 0x225   :  { %1373 = vmatpush.msra.mxu1 %v2026_v60  ;;  %v955_v60 = vpop.f32.mrf.mxu3 }
 0x226   :  { %1503 = vmatmul.msk.f32.vlgmr.msrb.gmra.mxu1 %vm157_vm0, %v2108_v27  ;;  %v1117_v27 = vpop.f32.mrf.mxu2 }
 0x227   :  { %1374 = vmatpush.msra.mxu1 %v2036_v62  ;;  %v1125_v16 = vmul.f32 %v1546_v48, %v1117_v27 }
 0x229   :  { %1375 = vmatpush.msra.mxu1 %v2042_v0 }
 0x22b   :  { %1376 = vmatpush.msra.mxu1 %v2053_v3  ;;  %v1539_v3 = vld [vmem:[%s2372_s7] ss:$0 sm:$0xff] }
 0x22c   :  { %v937_v9 = vmul.f32 %v1539_v3, %v930_v59 }
 0x22d   :  { %1377 = vmatpush.msra.mxu1 %v2061_v6  ;;  %v1036_v6 = vpop.f32.mrf.mxu3 }
 0x22e   :  { %v1044_v10 = vmul.f32 %v1543_v17, %v1036_v6  ;;  %v1225_v34 = vpop.f32.mrf.mxu2 }
 0x22f   :  { %1378 = vmatpush.msra.mxu1 %v2068_v11  ;;  %v963_v11 = vmul.f32 %v1540_v5, %v955_v60  ;;  %v1233_v58 = vmul.f32 %v1550_v39, %v1225_v34 }
 0x231   :  { %1379 = vmatpush.msra.mxu1 %v2074_v15  ;;  %v1542_v15 = vld [vmem:[%s2372_s7 + $0x3] ss:$0 sm:$0xff]  ;;  %v964_v21 = vadd.f32 %v963_v11, %v937_v9 }
 0x232   :  { %v1017_v25 = vmul.f32 %v1542_v15, %v1009_v1 }
 0x233   :  { %1380 = vmatpush.msra.mxu1 %v2085_v19 }
 0x235   :  { %1381 = vmatpush.msra.mxu1 %v2093_v23  ;;  %v1144_v14 = vpop.f32.mrf.mxu3 }
 0x236   :  { %v1152_v31 = vmul.f32 %v1547_v40, %v1144_v14 }
 0x237   :  { %1382 = vmatpush.msra.mxu1 %v2100_v26  ;;  %v1544_v26 = vld [vmem:[%s2372_s7 + $0x5] ss:$0 sm:$0xff] }
 0x239   :  { %1383 = vmatpush.msra.mxu1 %v2395_v28 }
 0x23b   :  { %1384 = vmatpush.msra.mxu1 %v2396_v37 }
 0x23d   :  { %1385 = vmatpush.msra.mxu1 %v2397_v41  ;;  %v1252_v29 = vpop.f32.mrf.mxu3 }
 0x23e   :  { %v1260_v41 = vmul.f32 %v1551_v38, %v1252_v29 }
 0x245   :  { %v1360_v59 = vpop.f32.mrf.mxu3 }
 0x26b   :  { %v864_v50 = vpop.f32.mrf.mxu1 }
 0x26c   :  { %v871_v51 = vmul.f32 %v1538_v47, %v864_v50 }
 0x26e   :  { %888 = vmatmul.f32.vlgmr.msra.gmra.mxu0 %v871_v51  ;;  %v1553_v51 = vld [vmem:[%s2372_s7 + $0xe] ss:$0 sm:$0xff] }
 0x26f   :  { %1088 = vmatpush.msra.mxu0 %v2154_v33 }
 0x276   :  { %1481 = vmatmul.msk.f32.vlgmr.msrb.gmra.mxu0 %vm157_vm0, %v2398_v52  ;;  %v1554_v52 = vld [vmem:[%s2372_s7 + $0xf] ss:$0 sm:$0xff] }
 0x277   :  { %1196 = vmatpush.msrb.mxu0 %v2154_v33 }
 0x27e   :  { %1489 = vmatmul.msk.f32.vlgmr.msra.gmra.mxu0 %vm157_vm0, %v2399_v53  ;;  %v1333_v53 = vpop.f32.mrf.mxu2 }
 0x27f   :  { %1304 = vmatpush.msra.mxu0 %v2154_v33  ;;  %v1545_v33 = vld [vmem:[%s2372_s7 + $0x6] ss:$0 sm:$0xff] }
 0x286   :  { %1497 = vmatmul.msk.f32.vlgmr.msrb.gmra.mxu0 %vm157_vm0, %v2400_v54 }
 0x28b   :  { %v2303_v62 = vpop.f32.mrf.mxu1 }
 0x28c   :  { %v911_v6 = vadd.f32 %v2301_v61, %v2303_v62 }
 0x28e   :  { %1505 = vmatmul.msk.f32.vlgmr.msra.gmra.mxu0 %vm157_vm0, %v2401_v55  ;;  %v1555_v55 = vld [vmem:[%s2372_s7 + $0x10] ss:$0 sm:$0xff]  ;;  %s1690_s7 = smov [#allocation9]  }
 0x28f   :  { %s1409_s25 = sshll.u32 %s1690_s7, 4  ;;  %s1410_s25 = int_to_ptr.vmem [resolvable:$true] %s1409_s25 }
 0x293   :  { %v1063_v4 = vpop.f32.mrf.mxu1 }
 0x294   :  { %v1071_v22 = vmul.f32 %v1544_v26, %v1063_v4 }
 0x29b   :  { %v1171_v24 = vpop.f32.mrf.mxu1 }
 0x29c   :  { %v1179_v45 = vmul.f32 %v1548_v42, %v1171_v24 }
 0x2a3   :  { %v1279_v28 = vpop.f32.mrf.mxu1 }
 0x2a4   :  { %v1287_v50 = vmul.f32 %v1552_v35, %v1279_v28 }
 0x2eb   :  { %v889_v0 = vpop.f32.mrf.mxu0 }
 0x2ec   :  { %v892_v2 = vadd.f32 %v889_v0, %v845_v63  ;;  %v1341_v0 = vmul.f32 %v1554_v52, %v1333_v53 }
 0x2ee   :  { %1391 = vst [vmem:[#allocation8] sm:$0xff] %v892_v2  ;;  %v1368_v2 = vmul.f32 %v1555_v55, %v1360_v59 }
 0x2ef   :  { %1403 = dma.vmem_to_hbm [thread:$0]  %s1399_s24, 128, %s1401_s22, [#allocation4]  }
 0x2f3   :  { %v982_v19 = vpop.f32.mrf.mxu0 }
 0x2f4   :  { %v990_v23 = vmul.f32 %v1541_v13, %v982_v19 }
 0x2f6   :  { %v991_v7 = vadd.f32 %v990_v23, %v964_v21 }
 0x2f8   :  { %v1018_v18 = vadd.f32 %v1017_v25, %v991_v7 }
 0x2fa   :  { %v1045_v44 = vadd.f32 %v1044_v10, %v1018_v18 }
 0x2fb   :  { %v1090_v46 = vpop.f32.mrf.mxu0 }
 0x2fc   :  { %v1072_v30 = vadd.f32 %v1071_v22, %v1045_v44  ;;  %v1098_v8 = vmul.f32 %v1545_v33, %v1090_v46 }
 0x2fe   :  { %v1099_v43 = vadd.f32 %v1098_v8, %v1072_v30 }
 0x300   :  { %v1126_v12 = vadd.f32 %v1125_v16, %v1099_v43 }
 0x302   :  { %v1153_v36 = vadd.f32 %v1152_v31, %v1126_v12 }
 0x303   :  { %v1198_v32 = vpop.f32.mrf.mxu0 }
 0x304   :  { %v1180_v49 = vadd.f32 %v1179_v45, %v1153_v36  ;;  %v1206_v56 = vmul.f32 %v1549_v20, %v1198_v32 }
 0x306   :  { %v1207_v37 = vadd.f32 %v1206_v56, %v1180_v49 }
 0x308   :  { %v1234_v47 = vadd.f32 %v1233_v58, %v1207_v37 }
 0x30a   :  { %v1261_v54 = vadd.f32 %v1260_v41, %v1234_v47 }
 0x30b   :  { %v1306_v57 = vpop.f32.mrf.mxu0 }
 0x30c   :  { %v1288_v60 = vadd.f32 %v1287_v50, %v1261_v54  ;;  %v1314_v63 = vmul.f32 %v1553_v51, %v1306_v57 }
 0x30e   :  { %v1315_v1 = vadd.f32 %v1314_v63, %v1288_v60 }
 0x310   :  { %v1342_v3 = vadd.f32 %v1341_v0, %v1315_v1 }
 0x312   :  { %v1369_v5 = vadd.f32 %v1368_v2, %v1342_v3 }
 0x314   :  { %1386 = vmatmul.f32.vlgmr.msra.gmra.mxu1 %v1369_v5 }
 0x391   :  { %v1387_v9 = vpop.f32.mrf.mxu1 }
 0x392   :  { %v1390_v11 = vadd.f32 %v1387_v9, %v911_v6 }
 0x394   :  { %1392 = vst [vmem:[#allocation9] sm:$0xff] %v1390_v11 }
 0x395   :  { %1414 = dma.vmem_to_hbm [thread:$0]  %s1410_s25, 128, %s1412_s27, [#allocation10]  }
 0x396   :  { %1680 = dma.done.wait [#allocation4], 128  }
 0x397   :  { %1681 = vsyncadd [#allocation4], 4294967168 }
 0x398   :  { %1682 = dma.done.wait [#allocation10], 128  }
 0x399   :  { %1683 = vsyncadd [#allocation10], 4294967168 }
 0x39a   :  { %1423 = vsyncpa [#allocation3], 1 }
 0x39b   :  { %1424 = vsyncpa [#allocation6], 1 }
 0x39c   :  { %1425 = vsyncpa [#allocation4], 1 }
 0x39d   :  { %1426 = vsyncpa [#allocation10], 1 }

</bundles_post_ra>
